<compile_context>
chip_gen: v5e
topology: v5e:2x2
jax: 0.10.0
libtpu: 0.0.40
codegen_flags: <defaults>
</compile_context>

<pallas_src>
import jax
import jax.numpy as jnp
import numpy as np
from jax.experimental import pallas as pl
from jax.experimental.pallas import tpu as pltpu


def make_kernel(B, T, H, K, O):
    def kernel(pre_ref, wrh_ref, ws_ref, bs_ref, wrs_ref, brs_ref,
               wc_ref, bc_ref, wo_ref, bo_ref, out_ref):
        # Load the small resident weights once; they are reused across all T steps.
        wrh = wrh_ref[...]    # (H, 4H)
        ws = ws_ref[...]      # (H, H//6)
        bs = bs_ref[...]      # (1, H//6)
        wrs = wrs_ref[...]    # (H//6, H)
        brs = brs_ref[...]    # (1, H)
        wc = wc_ref[...]      # (K*H, H)  fused conv weight (window order, oldest first)
        bc = bc_ref[...]      # (1, H)
        wo = wo_ref[...]      # (H, O)
        bo = bo_ref[...]      # (1, O)

        zero = jnp.zeros((B, H), jnp.float32)
        c = zero
        h = zero
        window = [zero] * K            # oldest -> newest, held in registers (no copies)
        inv_k = 1.0 / K

        # Fully unrolled recurrence over the (small, static) sequence length.
        for t in range(T):
            # pre[t] already contains x_t @ Wk_x + tv_t*(Wk_t + Wr_t) + (bk + br),
            # restricted to the used gate columns.
            z = pre_ref[t] + jnp.dot(h, wrh, preferred_element_type=jnp.float32)
            f = jax.nn.sigmoid(z[:, :H])
            i = jax.nn.sigmoid(z[:, H:2 * H])
            o = jax.nn.sigmoid(z[:, 2 * H:3 * H])
            g = jnp.tanh(z[:, 3 * H:])
            c = f * c + i * g
            h = o * jnp.tanh(c)

            # Rolling window of the last K hidden states (oldest first), like
            # tmp_h = cat((tmp_h[1:], h.unsqueeze(0)), 0) -- done purely in registers.
            window = window[1:] + [h]

            # local_theme = sigmoid(rescale(relu(scale(mean_k local_h))))
            theme_in = window[0]
            for k in range(1, K):
                theme_in = theme_in + window[k]
            theme_in = theme_in * inv_k
            theme = jnp.maximum(
                jnp.dot(theme_in, ws, preferred_element_type=jnp.float32) + bs, 0.0)
            theme = jax.nn.sigmoid(
                jnp.dot(theme, wrs, preferred_element_type=jnp.float32) + brs)

            # nn_conv over the K-window fused into ONE matmul: (B, K*H) @ (K*H, H)
            win = jnp.concatenate(window, axis=1)
            conv = jnp.dot(win, wc, preferred_element_type=jnp.float32) + bc

            r = theme * conv + h               # rnn_outputs + origin_h (residual)
            out_ref[t] = jax.nn.sigmoid(
                jnp.dot(r, wo, preferred_element_type=jnp.float32) + bo)

    return kernel


def stagenet_forward(x, time, params):
    (wkx, wkt, bk, wrh, wrt, br, ws, bs, wrs, brs, wc, bc, wo, bo) = params
    B, T, D = x.shape
    H = wrh.shape[0]
    G = wkx.shape[1]
    K = wc.shape[0]
    O = wo.shape[1]
    L = (G - 4 * H) // 2
    L2 = 2 * L

    x = x.astype(jnp.float32)
    time = time.astype(jnp.float32)

    # Only gate columns [2L : 2L+4H] are ever read by this ablation -> slice once.
    wkx_s = wkx[:, L2:]
    wt_s = (wkt + wrt)[:, L2:]         # time feature hits both kernels; pre-summed
    b_s = (bk + br)[:, L2:]            # pre-summed biases
    wrh_s = wrh[:, L2:]

    # Hoist the input projection off the serial critical path (one batched matmul),
    # produced directly in time-major layout (T, B, 4H).
    pre = (jnp.einsum('btd,dg->tbg', x, wkx_s)
           + jnp.transpose(time, (1, 0))[..., None] * wt_s
           + b_s)

    # Fused conv weight: (K, H_in, H_out) -> (K*H_in, H_out), window order (oldest first).
    wc_flat = wc.reshape(K * H, H)

    kernel = make_kernel(B, T, H, K, O)
    vmem = pl.BlockSpec(memory_space=pltpu.MemorySpace.VMEM)

    out = pl.pallas_call(
        kernel,
        out_shape=jax.ShapeDtypeStruct((T, B, O), jnp.float32),
        in_specs=[vmem] * 10,
        out_specs=vmem,
    )(pre, wrh_s, ws, bs, wrs, brs, wc_flat, bc, wo, bo)
    return jnp.transpose(out, (1, 0, 2))           # (B, T, O)


def reference_forward(x, time, params):
    """Pure-JAX port of the PyTorch forward (eval mode) for correctness checking."""
    (wkx, wkt, bk, wrh, wrt, br, ws, bs, wrs, brs, wc, bc, wo, bo) = params
    B, T, D = x.shape
    H = wrh.shape[0]
    G = wkx.shape[1]
    K = wc.shape[0]
    L = (G - 4 * H) // 2
    L2 = 2 * L
    c = jnp.zeros((B, H), jnp.float32)
    h = jnp.zeros((B, H), jnp.float32)
    tmp = jnp.zeros((K, B, H), jnp.float32)
    outs = []
    for t in range(T):
        xt = x[:, t, :]
        tv = time[:, t][:, None]
        z = (xt @ wkx + tv * wkt + bk) + (h @ wrh + tv * wrt + br)
        f = jax.nn.sigmoid(z[:, L2:L2 + H])
        i = jax.nn.sigmoid(z[:, L2 + H:L2 + 2 * H])
        o = jax.nn.sigmoid(z[:, L2 + 2 * H:L2 + 3 * H])
        g = jnp.tanh(z[:, L2 + 3 * H:L2 + 4 * H])
        c = f * c + i * g
        h = o * jnp.tanh(c)
        tmp = jnp.concatenate([tmp[1:], h[None]], axis=0)
        theme = jnp.mean(tmp, axis=0)
        theme = jax.nn.sigmoid(jnp.maximum(theme @ ws + bs, 0.0) @ wrs + brs)
        conv = bc + sum(tmp[k] @ wc[k] for k in range(K))
        r = theme * conv + h
        outs.append(jax.nn.sigmoid(r @ wo + bo))
    return jnp.stack(outs, axis=1)


if __name__ == "__main__":
    # input_dim=16, hidden_dim=24, conv_size=3, output_dim=4, levels=4 (chunk=6)
    B, T, D, H, L, K, O = 4, 8, 16, 24, 4, 3, 4
    G = 4 * H + 2 * L

    key = jax.random.PRNGKey(0)
    ks = jax.random.split(key, 12)

    def xavier(k, shape):
        fi, fo = shape
        a = (6.0 / (fi + fo)) ** 0.5
        return jax.random.uniform(k, shape, jnp.float32, -a, a)

    Wk = xavier(ks[0], (D + 1, G))
    # TODO(synk): PyTorch uses orthogonal init for the recurrent kernel; synthetic xavier here.
    Wr = xavier(ks[1], (H + 1, G))
    wkx, wkt = Wk[:D], Wk[D:D + 1]
    wrh, wrt = Wr[:H], Wr[H:H + 1]
    bk = jnp.zeros((1, G), jnp.float32)
    br = jnp.zeros((1, G), jnp.float32)
    ws = xavier(ks[2], (H, H // 6))
    bs = 0.01 * jax.random.normal(ks[3], (1, H // 6), jnp.float32)
    wrs = xavier(ks[4], (H // 6, H))
    brs = 0.01 * jax.random.normal(ks[5], (1, H), jnp.float32)
    conv_w = 0.1 * jax.random.normal(ks[6], (H, H, K), jnp.float32)  # torch layout (out, in, K)
    wc = jnp.transpose(conv_w, (2, 1, 0))                            # (K, in, out)
    bc = 0.01 * jax.random.normal(ks[7], (1, H), jnp.float32)
    wo = xavier(ks[8], (H, O))
    bo = jnp.zeros((1, O), jnp.float32)

    params = (wkx, wkt, bk, wrh, wrt, br, ws, bs, wrs, brs, wc, bc, wo, bo)

    x = jax.random.normal(ks[9], (B, T, D), jnp.float32)
    time = jax.random.uniform(ks[10], (B, T), jnp.float32)

    out = stagenet_forward(x, time, params)
    out = jax.block_until_ready(out)
    assert out.shape == (B, T, O)

    ref = reference_forward(x, time, params)
    np.testing.assert_allclose(np.asarray(out), np.asarray(ref), atol=2e-4, rtol=2e-4)
    print("KERNEL_OK")
</pallas_src>

<mosaic_0001>
module attributes {stable_mosaic.version = 11 : i64} {
  func.func @kernel(%arg0: memref<8x4x96xf32, #tpu.memory_space<vmem>>, %arg1: memref<24x96xf32, #tpu.memory_space<vmem>>, %arg2: memref<24x4xf32, #tpu.memory_space<vmem>>, %arg3: memref<1x4xf32, #tpu.memory_space<vmem>>, %arg4: memref<4x24xf32, #tpu.memory_space<vmem>>, %arg5: memref<1x24xf32, #tpu.memory_space<vmem>>, %arg6: memref<72x24xf32, #tpu.memory_space<vmem>>, %arg7: memref<1x24xf32, #tpu.memory_space<vmem>>, %arg8: memref<24x4xf32, #tpu.memory_space<vmem>>, %arg9: memref<1x4xf32, #tpu.memory_space<vmem>>, %arg10: memref<8x4x4xf32, #tpu.memory_space<vmem>>) attributes {dimension_semantics = [], scalar_prefetch = 0 : i64, scratch_operands = 0 : i64, tpu.core_type = #tpu.core_type<tc>} {
    %c0 = arith.constant 0 : index
    %c0_0 = arith.constant 0 : index
    %0 = vector.load %arg1[%c0, %c0_0] : memref<24x96xf32, #tpu.memory_space<vmem>>, vector<24x96xf32>
    %c0_1 = arith.constant 0 : index
    %c0_2 = arith.constant 0 : index
    %1 = vector.load %arg2[%c0_1, %c0_2] : memref<24x4xf32, #tpu.memory_space<vmem>>, vector<24x4xf32>
    %c0_3 = arith.constant 0 : index
    %c0_4 = arith.constant 0 : index
    %2 = vector.load %arg3[%c0_3, %c0_4] : memref<1x4xf32, #tpu.memory_space<vmem>>, vector<1x4xf32>
    %c0_5 = arith.constant 0 : index
    %c0_6 = arith.constant 0 : index
    %3 = vector.load %arg4[%c0_5, %c0_6] : memref<4x24xf32, #tpu.memory_space<vmem>>, vector<4x24xf32>
    %c0_7 = arith.constant 0 : index
    %c0_8 = arith.constant 0 : index
    %4 = vector.load %arg5[%c0_7, %c0_8] : memref<1x24xf32, #tpu.memory_space<vmem>>, vector<1x24xf32>
    %c0_9 = arith.constant 0 : index
    %c0_10 = arith.constant 0 : index
    %5 = vector.load %arg6[%c0_9, %c0_10] : memref<72x24xf32, #tpu.memory_space<vmem>>, vector<72x24xf32>
    %c0_11 = arith.constant 0 : index
    %c0_12 = arith.constant 0 : index
    %6 = vector.load %arg7[%c0_11, %c0_12] : memref<1x24xf32, #tpu.memory_space<vmem>>, vector<1x24xf32>
    %c0_13 = arith.constant 0 : index
    %c0_14 = arith.constant 0 : index
    %7 = vector.load %arg8[%c0_13, %c0_14] : memref<24x4xf32, #tpu.memory_space<vmem>>, vector<24x4xf32>
    %c0_15 = arith.constant 0 : index
    %c0_16 = arith.constant 0 : index
    %8 = vector.load %arg9[%c0_15, %c0_16] : memref<1x4xf32, #tpu.memory_space<vmem>>, vector<1x4xf32>
    %cst = arith.constant 0.000000e+00 : f32
    %9 = vector.broadcast %cst : f32 to vector<4x24xf32>
    %c0_17 = arith.constant 0 : index
    %c0_18 = arith.constant 0 : index
    %c0_19 = arith.constant 0 : index
    %10 = vector.load %arg0[%c0_17, %c0_18, %c0_19] : memref<8x4x96xf32, #tpu.memory_space<vmem>>, vector<1x4x96xf32>
    %11 = vector.shape_cast %10 : vector<1x4x96xf32> to vector<4x96xf32>
    %cst_20 = arith.constant dense<0.000000e+00> : vector<4x96xf32>
    %12 = tpu.matmul %9, %0, %cst_20 {dimension_numbers = #tpu.dot_dimension_numbers<[1], [0], [0], [1], [0, 0, 1, 1], [], []>} : vector<4x24xf32>, vector<24x96xf32>, vector<4x96xf32> -> vector<4x96xf32>
    %13 = arith.addf %11, %12 : vector<4x96xf32>
    %14 = vector.extract_strided_slice %13 {offsets = [0, 0], sizes = [4, 24], strides = [1, 1]} : vector<4x96xf32> to vector<4x24xf32>
    %15 = arith.negf %14 : vector<4x24xf32>
    %16 = math.exp %15 : vector<4x24xf32>
    %cst_21 = arith.constant 1.000000e+00 : f32
    %17 = vector.broadcast %cst_21 : f32 to vector<4x24xf32>
    %18 = arith.addf %17, %16 : vector<4x24xf32>
    %19 = arith.divf %17, %18 : vector<4x24xf32>
    %20 = vector.extract_strided_slice %13 {offsets = [0, 24], sizes = [4, 24], strides = [1, 1]} : vector<4x96xf32> to vector<4x24xf32>
    %21 = arith.negf %20 : vector<4x24xf32>
    %22 = math.exp %21 : vector<4x24xf32>
    %cst_22 = arith.constant 1.000000e+00 : f32
    %23 = vector.broadcast %cst_22 : f32 to vector<4x24xf32>
    %24 = arith.addf %23, %22 : vector<4x24xf32>
    %25 = arith.divf %23, %24 : vector<4x24xf32>
    %26 = vector.extract_strided_slice %13 {offsets = [0, 48], sizes = [4, 24], strides = [1, 1]} : vector<4x96xf32> to vector<4x24xf32>
    %27 = arith.negf %26 : vector<4x24xf32>
    %28 = math.exp %27 : vector<4x24xf32>
    %cst_23 = arith.constant 1.000000e+00 : f32
    %29 = vector.broadcast %cst_23 : f32 to vector<4x24xf32>
    %30 = arith.addf %29, %28 : vector<4x24xf32>
    %31 = arith.divf %29, %30 : vector<4x24xf32>
    %32 = vector.extract_strided_slice %13 {offsets = [0, 72], sizes = [4, 24], strides = [1, 1]} : vector<4x96xf32> to vector<4x24xf32>
    %33 = math.tanh %32 : vector<4x24xf32>
    %34 = arith.mulf %19, %9 : vector<4x24xf32>
    %35 = arith.mulf %25, %33 : vector<4x24xf32>
    %36 = arith.addf %34, %35 : vector<4x24xf32>
    %37 = math.tanh %36 : vector<4x24xf32>
    %38 = arith.mulf %31, %37 : vector<4x24xf32>
    %39 = arith.addf %9, %9 : vector<4x24xf32>
    %40 = arith.addf %39, %38 : vector<4x24xf32>
    %cst_24 = arith.constant 0.333333343 : f32
    %41 = vector.broadcast %cst_24 : f32 to vector<4x24xf32>
    %42 = arith.mulf %40, %41 : vector<4x24xf32>
    %cst_25 = arith.constant dense<0.000000e+00> : vector<4x4xf32>
    %43 = tpu.matmul %42, %1, %cst_25 {dimension_numbers = #tpu.dot_dimension_numbers<[1], [0], [0], [1], [0, 0, 1, 1], [], []>} : vector<4x24xf32>, vector<24x4xf32>, vector<4x4xf32> -> vector<4x4xf32>
    %44 = vector.broadcast %2 : vector<1x4xf32> to vector<4x4xf32>
    %45 = arith.addf %43, %44 : vector<4x4xf32>
    %cst_26 = arith.constant 0.000000e+00 : f32
    %46 = vector.broadcast %cst_26 : f32 to vector<4x4xf32>
    %47 = arith.maximumf %45, %46 : vector<4x4xf32>
    %cst_27 = arith.constant dense<0.000000e+00> : vector<4x24xf32>
    %48 = tpu.matmul %47, %3, %cst_27 {dimension_numbers = #tpu.dot_dimension_numbers<[1], [0], [0], [1], [0, 0, 1, 1], [], []>} : vector<4x4xf32>, vector<4x24xf32>, vector<4x24xf32> -> vector<4x24xf32>
    %49 = vector.broadcast %4 : vector<1x24xf32> to vector<4x24xf32>
    %50 = arith.addf %48, %49 : vector<4x24xf32>
    %51 = arith.negf %50 : vector<4x24xf32>
    %52 = math.exp %51 : vector<4x24xf32>
    %cst_28 = arith.constant 1.000000e+00 : f32
    %53 = vector.broadcast %cst_28 : f32 to vector<4x24xf32>
    %54 = arith.addf %53, %52 : vector<4x24xf32>
    %55 = arith.divf %53, %54 : vector<4x24xf32>
    %56 = tpu.concatenate %9, %9, %38 in 1 : vector<4x24xf32>, vector<4x24xf32>, vector<4x24xf32> -> vector<4x72xf32>
    %cst_29 = arith.constant dense<0.000000e+00> : vector<4x24xf32>
    %57 = tpu.matmul %56, %5, %cst_29 {dimension_numbers = #tpu.dot_dimension_numbers<[1], [0], [0], [1], [0, 0, 1, 1], [], []>} : vector<4x72xf32>, vector<72x24xf32>, vector<4x24xf32> -> vector<4x24xf32>
    %58 = vector.broadcast %6 : vector<1x24xf32> to vector<4x24xf32>
    %59 = arith.addf %57, %58 : vector<4x24xf32>
    %60 = arith.mulf %55, %59 : vector<4x24xf32>
    %61 = arith.addf %60, %38 : vector<4x24xf32>
    %cst_30 = arith.constant dense<0.000000e+00> : vector<4x4xf32>
    %62 = tpu.matmul %61, %7, %cst_30 {dimension_numbers = #tpu.dot_dimension_numbers<[1], [0], [0], [1], [0, 0, 1, 1], [], []>} : vector<4x24xf32>, vector<24x4xf32>, vector<4x4xf32> -> vector<4x4xf32>
    %63 = vector.broadcast %8 : vector<1x4xf32> to vector<4x4xf32>
    %64 = arith.addf %62, %63 : vector<4x4xf32>
    %65 = arith.negf %64 : vector<4x4xf32>
    %66 = math.exp %65 : vector<4x4xf32>
    %cst_31 = arith.constant 1.000000e+00 : f32
    %67 = vector.broadcast %cst_31 : f32 to vector<4x4xf32>
    %68 = arith.addf %67, %66 : vector<4x4xf32>
    %69 = arith.divf %67, %68 : vector<4x4xf32>
    %c0_32 = arith.constant 0 : index
    %c0_33 = arith.constant 0 : index
    %c0_34 = arith.constant 0 : index
    %70 = vector.load %arg10[%c0_32, %c0_33, %c0_34] : memref<8x4x4xf32, #tpu.memory_space<vmem>>, vector<1x4x4xf32>
    %71 = vector.shape_cast %70 : vector<1x4x4xf32> to vector<4x4xf32>
    %72 = vector.shape_cast %69 : vector<4x4xf32> to vector<1x4x4xf32>
    tpu.vector_store %arg10[%c0_32, %c0_33, %c0_34], %72 {strides = array<i32>} : memref<8x4x4xf32, #tpu.memory_space<vmem>>, vector<1x4x4xf32>,
    %c1 = arith.constant 1 : index
    %c0_35 = arith.constant 0 : index
    %c0_36 = arith.constant 0 : index
    %73 = vector.load %arg0[%c1, %c0_35, %c0_36] : memref<8x4x96xf32, #tpu.memory_space<vmem>>, vector<1x4x96xf32>
    %74 = vector.shape_cast %73 : vector<1x4x96xf32> to vector<4x96xf32>
    %cst_37 = arith.constant dense<0.000000e+00> : vector<4x96xf32>
    %75 = tpu.matmul %38, %0, %cst_37 {dimension_numbers = #tpu.dot_dimension_numbers<[1], [0], [0], [1], [0, 0, 1, 1], [], []>} : vector<4x24xf32>, vector<24x96xf32>, vector<4x96xf32> -> vector<4x96xf32>
    %76 = arith.addf %74, %75 : vector<4x96xf32>
    %77 = vector.extract_strided_slice %76 {offsets = [0, 0], sizes = [4, 24], strides = [1, 1]} : vector<4x96xf32> to vector<4x24xf32>
    %78 = arith.negf %77 : vector<4x24xf32>
    %79 = math.exp %78 : vector<4x24xf32>
    %cst_38 = arith.constant 1.000000e+00 : f32
    %80 = vector.broadcast %cst_38 : f32 to vector<4x24xf32>
    %81 = arith.addf %80, %79 : vector<4x24xf32>
    %82 = arith.divf %80, %81 : vector<4x24xf32>
    %83 = vector.extract_strided_slice %76 {offsets = [0, 24], sizes = [4, 24], strides = [1, 1]} : vector<4x96xf32> to vector<4x24xf32>
    %84 = arith.negf %83 : vector<4x24xf32>
    %85 = math.exp %84 : vector<4x24xf32>
    %cst_39 = arith.constant 1.000000e+00 : f32
    %86 = vector.broadcast %cst_39 : f32 to vector<4x24xf32>
    %87 = arith.addf %86, %85 : vector<4x24xf32>
    %88 = arith.divf %86, %87 : vector<4x24xf32>
    %89 = vector.extract_strided_slice %76 {offsets = [0, 48], sizes = [4, 24], strides = [1, 1]} : vector<4x96xf32> to vector<4x24xf32>
    %90 = arith.negf %89 : vector<4x24xf32>
    %91 = math.exp %90 : vector<4x24xf32>
    %cst_40 = arith.constant 1.000000e+00 : f32
    %92 = vector.broadcast %cst_40 : f32 to vector<4x24xf32>
    %93 = arith.addf %92, %91 : vector<4x24xf32>
    %94 = arith.divf %92, %93 : vector<4x24xf32>
    %95 = vector.extract_strided_slice %76 {offsets = [0, 72], sizes = [4, 24], strides = [1, 1]} : vector<4x96xf32> to vector<4x24xf32>
    %96 = math.tanh %95 : vector<4x24xf32>
    %97 = arith.mulf %82, %36 : vector<4x24xf32>
    %98 = arith.mulf %88, %96 : vector<4x24xf32>
    %99 = arith.addf %97, %98 : vector<4x24xf32>
    %100 = math.tanh %99 : vector<4x24xf32>
    %101 = arith.mulf %94, %100 : vector<4x24xf32>
    %102 = arith.addf %9, %38 : vector<4x24xf32>
    %103 = arith.addf %102, %101 : vector<4x24xf32>
    %cst_41 = arith.constant 0.333333343 : f32
    %104 = vector.broadcast %cst_41 : f32 to vector<4x24xf32>
    %105 = arith.mulf %103, %104 : vector<4x24xf32>
    %cst_42 = arith.constant dense<0.000000e+00> : vector<4x4xf32>
    %106 = tpu.matmul %105, %1, %cst_42 {dimension_numbers = #tpu.dot_dimension_numbers<[1], [0], [0], [1], [0, 0, 1, 1], [], []>} : vector<4x24xf32>, vector<24x4xf32>, vector<4x4xf32> -> vector<4x4xf32>
    %107 = vector.broadcast %2 : vector<1x4xf32> to vector<4x4xf32>
    %108 = arith.addf %106, %107 : vector<4x4xf32>
    %cst_43 = arith.constant 0.000000e+00 : f32
    %109 = vector.broadcast %cst_43 : f32 to vector<4x4xf32>
    %110 = arith.maximumf %108, %109 : vector<4x4xf32>
    %cst_44 = arith.constant dense<0.000000e+00> : vector<4x24xf32>
    %111 = tpu.matmul %110, %3, %cst_44 {dimension_numbers = #tpu.dot_dimension_numbers<[1], [0], [0], [1], [0, 0, 1, 1], [], []>} : vector<4x4xf32>, vector<4x24xf32>, vector<4x24xf32> -> vector<4x24xf32>
    %112 = vector.broadcast %4 : vector<1x24xf32> to vector<4x24xf32>
    %113 = arith.addf %111, %112 : vector<4x24xf32>
    %114 = arith.negf %113 : vector<4x24xf32>
    %115 = math.exp %114 : vector<4x24xf32>
    %cst_45 = arith.constant 1.000000e+00 : f32
    %116 = vector.broadcast %cst_45 : f32 to vector<4x24xf32>
    %117 = arith.addf %116, %115 : vector<4x24xf32>
    %118 = arith.divf %116, %117 : vector<4x24xf32>
    %119 = tpu.concatenate %9, %38, %101 in 1 : vector<4x24xf32>, vector<4x24xf32>, vector<4x24xf32> -> vector<4x72xf32>
    %cst_46 = arith.constant dense<0.000000e+00> : vector<4x24xf32>
    %120 = tpu.matmul %119, %5, %cst_46 {dimension_numbers = #tpu.dot_dimension_numbers<[1], [0], [0], [1], [0, 0, 1, 1], [], []>} : vector<4x72xf32>, vector<72x24xf32>, vector<4x24xf32> -> vector<4x24xf32>
    %121 = vector.broadcast %6 : vector<1x24xf32> to vector<4x24xf32>
    %122 = arith.addf %120, %121 : vector<4x24xf32>
    %123 = arith.mulf %118, %122 : vector<4x24xf32>
    %124 = arith.addf %123, %101 : vector<4x24xf32>
    %cst_47 = arith.constant dense<0.000000e+00> : vector<4x4xf32>
    %125 = tpu.matmul %124, %7, %cst_47 {dimension_numbers = #tpu.dot_dimension_numbers<[1], [0], [0], [1], [0, 0, 1, 1], [], []>} : vector<4x24xf32>, vector<24x4xf32>, vector<4x4xf32> -> vector<4x4xf32>
    %126 = vector.broadcast %8 : vector<1x4xf32> to vector<4x4xf32>
    %127 = arith.addf %125, %126 : vector<4x4xf32>
    %128 = arith.negf %127 : vector<4x4xf32>
    %129 = math.exp %128 : vector<4x4xf32>
    %cst_48 = arith.constant 1.000000e+00 : f32
    %130 = vector.broadcast %cst_48 : f32 to vector<4x4xf32>
    %131 = arith.addf %130, %129 : vector<4x4xf32>
    %132 = arith.divf %130, %131 : vector<4x4xf32>
    %c1_49 = arith.constant 1 : index
    %c0_50 = arith.constant 0 : index
    %c0_51 = arith.constant 0 : index
    %133 = vector.load %arg10[%c1_49, %c0_50, %c0_51] : memref<8x4x4xf32, #tpu.memory_space<vmem>>, vector<1x4x4xf32>
    %134 = vector.shape_cast %133 : vector<1x4x4xf32> to vector<4x4xf32>
    %135 = vector.shape_cast %132 : vector<4x4xf32> to vector<1x4x4xf32>
    tpu.vector_store %arg10[%c1_49, %c0_50, %c0_51], %135 {strides = array<i32>} : memref<8x4x4xf32, #tpu.memory_space<vmem>>, vector<1x4x4xf32>,
    %c2 = arith.constant 2 : index
    %c0_52 = arith.constant 0 : index
    %c0_53 = arith.constant 0 : index
    %136 = vector.load %arg0[%c2, %c0_52, %c0_53] : memref<8x4x96xf32, #tpu.memory_space<vmem>>, vector<1x4x96xf32>
    %137 = vector.shape_cast %136 : vector<1x4x96xf32> to vector<4x96xf32>
    %cst_54 = arith.constant dense<0.000000e+00> : vector<4x96xf32>
    %138 = tpu.matmul %101, %0, %cst_54 {dimension_numbers = #tpu.dot_dimension_numbers<[1], [0], [0], [1], [0, 0, 1, 1], [], []>} : vector<4x24xf32>, vector<24x96xf32>, vector<4x96xf32> -> vector<4x96xf32>
    %139 = arith.addf %137, %138 : vector<4x96xf32>
    %140 = vector.extract_strided_slice %139 {offsets = [0, 0], sizes = [4, 24], strides = [1, 1]} : vector<4x96xf32> to vector<4x24xf32>
    %141 = arith.negf %140 : vector<4x24xf32>
    %142 = math.exp %141 : vector<4x24xf32>
    %cst_55 = arith.constant 1.000000e+00 : f32
    %143 = vector.broadcast %cst_55 : f32 to vector<4x24xf32>
    %144 = arith.addf %143, %142 : vector<4x24xf32>
    %145 = arith.divf %143, %144 : vector<4x24xf32>
    %146 = vector.extract_strided_slice %139 {offsets = [0, 24], sizes = [4, 24], strides = [1, 1]} : vector<4x96xf32> to vector<4x24xf32>
    %147 = arith.negf %146 : vector<4x24xf32>
    %148 = math.exp %147 : vector<4x24xf32>
    %cst_56 = arith.constant 1.000000e+00 : f32
    %149 = vector.broadcast %cst_56 : f32 to vector<4x24xf32>
    %150 = arith.addf %149, %148 : vector<4x24xf32>
    %151 = arith.divf %149, %150 : vector<4x24xf32>
    %152 = vector.extract_strided_slice %139 {offsets = [0, 48], sizes = [4, 24], strides = [1, 1]} : vector<4x96xf32> to vector<4x24xf32>
    %153 = arith.negf %152 : vector<4x24xf32>
    %154 = math.exp %153 : vector<4x24xf32>
    %cst_57 = arith.constant 1.000000e+00 : f32
    %155 = vector.broadcast %cst_57 : f32 to vector<4x24xf32>
    %156 = arith.addf %155, %154 : vector<4x24xf32>
    %157 = arith.divf %155, %156 : vector<4x24xf32>
    %158 = vector.extract_strided_slice %139 {offsets = [0, 72], sizes = [4, 24], strides = [1, 1]} : vector<4x96xf32> to vector<4x24xf32>
    %159 = math.tanh %158 : vector<4x24xf32>
    %160 = arith.mulf %145, %99 : vector<4x24xf32>
    %161 = arith.mulf %151, %159 : vector<4x24xf32>
    %162 = arith.addf %160, %161 : vector<4x24xf32>
    %163 = math.tanh %162 : vector<4x24xf32>
    %164 = arith.mulf %157, %163 : vector<4x24xf32>
    %165 = arith.addf %38, %101 : vector<4x24xf32>
    %166 = arith.addf %165, %164 : vector<4x24xf32>
    %cst_58 = arith.constant 0.333333343 : f32
    %167 = vector.broadcast %cst_58 : f32 to vector<4x24xf32>
    %168 = arith.mulf %166, %167 : vector<4x24xf32>
    %cst_59 = arith.constant dense<0.000000e+00> : vector<4x4xf32>
    %169 = tpu.matmul %168, %1, %cst_59 {dimension_numbers = #tpu.dot_dimension_numbers<[1], [0], [0], [1], [0, 0, 1, 1], [], []>} : vector<4x24xf32>, vector<24x4xf32>, vector<4x4xf32> -> vector<4x4xf32>
    %170 = vector.broadcast %2 : vector<1x4xf32> to vector<4x4xf32>
    %171 = arith.addf %169, %170 : vector<4x4xf32>
    %cst_60 = arith.constant 0.000000e+00 : f32
    %172 = vector.broadcast %cst_60 : f32 to vector<4x4xf32>
    %173 = arith.maximumf %171, %172 : vector<4x4xf32>
    %cst_61 = arith.constant dense<0.000000e+00> : vector<4x24xf32>
    %174 = tpu.matmul %173, %3, %cst_61 {dimension_numbers = #tpu.dot_dimension_numbers<[1], [0], [0], [1], [0, 0, 1, 1], [], []>} : vector<4x4xf32>, vector<4x24xf32>, vector<4x24xf32> -> vector<4x24xf32>
    %175 = vector.broadcast %4 : vector<1x24xf32> to vector<4x24xf32>
    %176 = arith.addf %174, %175 : vector<4x24xf32>
    %177 = arith.negf %176 : vector<4x24xf32>
    %178 = math.exp %177 : vector<4x24xf32>
    %cst_62 = arith.constant 1.000000e+00 : f32
    %179 = vector.broadcast %cst_62 : f32 to vector<4x24xf32>
    %180 = arith.addf %179, %178 : vector<4x24xf32>
    %181 = arith.divf %179, %180 : vector<4x24xf32>
    %182 = tpu.concatenate %38, %101, %164 in 1 : vector<4x24xf32>, vector<4x24xf32>, vector<4x24xf32> -> vector<4x72xf32>
    %cst_63 = arith.constant dense<0.000000e+00> : vector<4x24xf32>
    %183 = tpu.matmul %182, %5, %cst_63 {dimension_numbers = #tpu.dot_dimension_numbers<[1], [0], [0], [1], [0, 0, 1, 1], [], []>} : vector<4x72xf32>, vector<72x24xf32>, vector<4x24xf32> -> vector<4x24xf32>
    %184 = vector.broadcast %6 : vector<1x24xf32> to vector<4x24xf32>
    %185 = arith.addf %183, %184 : vector<4x24xf32>
    %186 = arith.mulf %181, %185 : vector<4x24xf32>
    %187 = arith.addf %186, %164 : vector<4x24xf32>
    %cst_64 = arith.constant dense<0.000000e+00> : vector<4x4xf32>
    %188 = tpu.matmul %187, %7, %cst_64 {dimension_numbers = #tpu.dot_dimension_numbers<[1], [0], [0], [1], [0, 0, 1, 1], [], []>} : vector<4x24xf32>, vector<24x4xf32>, vector<4x4xf32> -> vector<4x4xf32>
    %189 = vector.broadcast %8 : vector<1x4xf32> to vector<4x4xf32>
    %190 = arith.addf %188, %189 : vector<4x4xf32>
    %191 = arith.negf %190 : vector<4x4xf32>
    %192 = math.exp %191 : vector<4x4xf32>
    %cst_65 = arith.constant 1.000000e+00 : f32
    %193 = vector.broadcast %cst_65 : f32 to vector<4x4xf32>
    %194 = arith.addf %193, %192 : vector<4x4xf32>
    %195 = arith.divf %193, %194 : vector<4x4xf32>
    %c2_66 = arith.constant 2 : index
    %c0_67 = arith.constant 0 : index
    %c0_68 = arith.constant 0 : index
    %196 = vector.load %arg10[%c2_66, %c0_67, %c0_68] : memref<8x4x4xf32, #tpu.memory_space<vmem>>, vector<1x4x4xf32>
    %197 = vector.shape_cast %196 : vector<1x4x4xf32> to vector<4x4xf32>
    %198 = vector.shape_cast %195 : vector<4x4xf32> to vector<1x4x4xf32>
    tpu.vector_store %arg10[%c2_66, %c0_67, %c0_68], %198 {strides = array<i32>} : memref<8x4x4xf32, #tpu.memory_space<vmem>>, vector<1x4x4xf32>,
    %c3 = arith.constant 3 : index
    %c0_69 = arith.constant 0 : index
    %c0_70 = arith.constant 0 : index
    %199 = vector.load %arg0[%c3, %c0_69, %c0_70] : memref<8x4x96xf32, #tpu.memory_space<vmem>>, vector<1x4x96xf32>
    %200 = vector.shape_cast %199 : vector<1x4x96xf32> to vector<4x96xf32>
    %cst_71 = arith.constant dense<0.000000e+00> : vector<4x96xf32>
    %201 = tpu.matmul %164, %0, %cst_71 {dimension_numbers = #tpu.dot_dimension_numbers<[1], [0], [0], [1], [0, 0, 1, 1], [], []>} : vector<4x24xf32>, vector<24x96xf32>, vector<4x96xf32> -> vector<4x96xf32>
    %202 = arith.addf %200, %201 : vector<4x96xf32>
    %203 = vector.extract_strided_slice %202 {offsets = [0, 0], sizes = [4, 24], strides = [1, 1]} : vector<4x96xf32> to vector<4x24xf32>
    %204 = arith.negf %203 : vector<4x24xf32>
    %205 = math.exp %204 : vector<4x24xf32>
    %cst_72 = arith.constant 1.000000e+00 : f32
    %206 = vector.broadcast %cst_72 : f32 to vector<4x24xf32>
    %207 = arith.addf %206, %205 : vector<4x24xf32>
    %208 = arith.divf %206, %207 : vector<4x24xf32>
    %209 = vector.extract_strided_slice %202 {offsets = [0, 24], sizes = [4, 24], strides = [1, 1]} : vector<4x96xf32> to vector<4x24xf32>
    %210 = arith.negf %209 : vector<4x24xf32>
    %211 = math.exp %210 : vector<4x24xf32>
    %cst_73 = arith.constant 1.000000e+00 : f32
    %212 = vector.broadcast %cst_73 : f32 to vector<4x24xf32>
    %213 = arith.addf %212, %211 : vector<4x24xf32>
    %214 = arith.divf %212, %213 : vector<4x24xf32>
    %215 = vector.extract_strided_slice %202 {offsets = [0, 48], sizes = [4, 24], strides = [1, 1]} : vector<4x96xf32> to vector<4x24xf32>
    %216 = arith.negf %215 : vector<4x24xf32>
    %217 = math.exp %216 : vector<4x24xf32>
    %cst_74 = arith.constant 1.000000e+00 : f32
    %218 = vector.broadcast %cst_74 : f32 to vector<4x24xf32>
    %219 = arith.addf %218, %217 : vector<4x24xf32>
    %220 = arith.divf %218, %219 : vector<4x24xf32>
    %221 = vector.extract_strided_slice %202 {offsets = [0, 72], sizes = [4, 24], strides = [1, 1]} : vector<4x96xf32> to vector<4x24xf32>
    %222 = math.tanh %221 : vector<4x24xf32>
    %223 = arith.mulf %208, %162 : vector<4x24xf32>
    %224 = arith.mulf %214, %222 : vector<4x24xf32>
    %225 = arith.addf %223, %224 : vector<4x24xf32>
    %226 = math.tanh %225 : vector<4x24xf32>
    %227 = arith.mulf %220, %226 : vector<4x24xf32>
    %228 = arith.addf %101, %164 : vector<4x24xf32>
    %229 = arith.addf %228, %227 : vector<4x24xf32>
    %cst_75 = arith.constant 0.333333343 : f32
    %230 = vector.broadcast %cst_75 : f32 to vector<4x24xf32>
    %231 = arith.mulf %229, %230 : vector<4x24xf32>
    %cst_76 = arith.constant dense<0.000000e+00> : vector<4x4xf32>
    %232 = tpu.matmul %231, %1, %cst_76 {dimension_numbers = #tpu.dot_dimension_numbers<[1], [0], [0], [1], [0, 0, 1, 1], [], []>} : vector<4x24xf32>, vector<24x4xf32>, vector<4x4xf32> -> vector<4x4xf32>
    %233 = vector.broadcast %2 : vector<1x4xf32> to vector<4x4xf32>
    %234 = arith.addf %232, %233 : vector<4x4xf32>
    %cst_77 = arith.constant 0.000000e+00 : f32
    %235 = vector.broadcast %cst_77 : f32 to vector<4x4xf32>
    %236 = arith.maximumf %234, %235 : vector<4x4xf32>
    %cst_78 = arith.constant dense<0.000000e+00> : vector<4x24xf32>
    %237 = tpu.matmul %236, %3, %cst_78 {dimension_numbers = #tpu.dot_dimension_numbers<[1], [0], [0], [1], [0, 0, 1, 1], [], []>} : vector<4x4xf32>, vector<4x24xf32>, vector<4x24xf32> -> vector<4x24xf32>
    %238 = vector.broadcast %4 : vector<1x24xf32> to vector<4x24xf32>
    %239 = arith.addf %237, %238 : vector<4x24xf32>
    %240 = arith.negf %239 : vector<4x24xf32>
    %241 = math.exp %240 : vector<4x24xf32>
    %cst_79 = arith.constant 1.000000e+00 : f32
    %242 = vector.broadcast %cst_79 : f32 to vector<4x24xf32>
    %243 = arith.addf %242, %241 : vector<4x24xf32>
    %244 = arith.divf %242, %243 : vector<4x24xf32>
    %245 = tpu.concatenate %101, %164, %227 in 1 : vector<4x24xf32>, vector<4x24xf32>, vector<4x24xf32> -> vector<4x72xf32>
    %cst_80 = arith.constant dense<0.000000e+00> : vector<4x24xf32>
    %246 = tpu.matmul %245, %5, %cst_80 {dimension_numbers = #tpu.dot_dimension_numbers<[1], [0], [0], [1], [0, 0, 1, 1], [], []>} : vector<4x72xf32>, vector<72x24xf32>, vector<4x24xf32> -> vector<4x24xf32>
    %247 = vector.broadcast %6 : vector<1x24xf32> to vector<4x24xf32>
    %248 = arith.addf %246, %247 : vector<4x24xf32>
    %249 = arith.mulf %244, %248 : vector<4x24xf32>
    %250 = arith.addf %249, %227 : vector<4x24xf32>
    %cst_81 = arith.constant dense<0.000000e+00> : vector<4x4xf32>
    %251 = tpu.matmul %250, %7, %cst_81 {dimension_numbers = #tpu.dot_dimension_numbers<[1], [0], [0], [1], [0, 0, 1, 1], [], []>} : vector<4x24xf32>, vector<24x4xf32>, vector<4x4xf32> -> vector<4x4xf32>
    %252 = vector.broadcast %8 : vector<1x4xf32> to vector<4x4xf32>
    %253 = arith.addf %251, %252 : vector<4x4xf32>
    %254 = arith.negf %253 : vector<4x4xf32>
    %255 = math.exp %254 : vector<4x4xf32>
    %cst_82 = arith.constant 1.000000e+00 : f32
    %256 = vector.broadcast %cst_82 : f32 to vector<4x4xf32>
    %257 = arith.addf %256, %255 : vector<4x4xf32>
    %258 = arith.divf %256, %257 : vector<4x4xf32>
    %c3_83 = arith.constant 3 : index
    %c0_84 = arith.constant 0 : index
    %c0_85 = arith.constant 0 : index
    %259 = vector.load %arg10[%c3_83, %c0_84, %c0_85] : memref<8x4x4xf32, #tpu.memory_space<vmem>>, vector<1x4x4xf32>
    %260 = vector.shape_cast %259 : vector<1x4x4xf32> to vector<4x4xf32>
    %261 = vector.shape_cast %258 : vector<4x4xf32> to vector<1x4x4xf32>
    tpu.vector_store %arg10[%c3_83, %c0_84, %c0_85], %261 {strides = array<i32>} : memref<8x4x4xf32, #tpu.memory_space<vmem>>, vector<1x4x4xf32>,
    %c4 = arith.constant 4 : index
    %c0_86 = arith.constant 0 : index
    %c0_87 = arith.constant 0 : index
    %262 = vector.load %arg0[%c4, %c0_86, %c0_87] : memref<8x4x96xf32, #tpu.memory_space<vmem>>, vector<1x4x96xf32>
    %263 = vector.shape_cast %262 : vector<1x4x96xf32> to vector<4x96xf32>
    %cst_88 = arith.constant dense<0.000000e+00> : vector<4x96xf32>
    %264 = tpu.matmul %227, %0, %cst_88 {dimension_numbers = #tpu.dot_dimension_numbers<[1], [0], [0], [1], [0, 0, 1, 1], [], []>} : vector<4x24xf32>, vector<24x96xf32>, vector<4x96xf32> -> vector<4x96xf32>
    %265 = arith.addf %263, %264 : vector<4x96xf32>
    %266 = vector.extract_strided_slice %265 {offsets = [0, 0], sizes = [4, 24], strides = [1, 1]} : vector<4x96xf32> to vector<4x24xf32>
    %267 = arith.negf %266 : vector<4x24xf32>
    %268 = math.exp %267 : vector<4x24xf32>
    %cst_89 = arith.constant 1.000000e+00 : f32
    %269 = vector.broadcast %cst_89 : f32 to vector<4x24xf32>
    %270 = arith.addf %269, %268 : vector<4x24xf32>
    %271 = arith.divf %269, %270 : vector<4x24xf32>
    %272 = vector.extract_strided_slice %265 {offsets = [0, 24], sizes = [4, 24], strides = [1, 1]} : vector<4x96xf32> to vector<4x24xf32>
    %273 = arith.negf %272 : vector<4x24xf32>
    %274 = math.exp %273 : vector<4x24xf32>
    %cst_90 = arith.constant 1.000000e+00 : f32
    %275 = vector.broadcast %cst_90 : f32 to vector<4x24xf32>
    %276 = arith.addf %275, %274 : vector<4x24xf32>
    %277 = arith.divf %275, %276 : vector<4x24xf32>
    %278 = vector.extract_strided_slice %265 {offsets = [0, 48], sizes = [4, 24], strides = [1, 1]} : vector<4x96xf32> to vector<4x24xf32>
    %279 = arith.negf %278 : vector<4x24xf32>
    %280 = math.exp %279 : vector<4x24xf32>
    %cst_91 = arith.constant 1.000000e+00 : f32
    %281 = vector.broadcast %cst_91 : f32 to vector<4x24xf32>
    %282 = arith.addf %281, %280 : vector<4x24xf32>
    %283 = arith.divf %281, %282 : vector<4x24xf32>
    %284 = vector.extract_strided_slice %265 {offsets = [0, 72], sizes = [4, 24], strides = [1, 1]} : vector<4x96xf32> to vector<4x24xf32>
    %285 = math.tanh %284 : vector<4x24xf32>
    %286 = arith.mulf %271, %225 : vector<4x24xf32>
    %287 = arith.mulf %277, %285 : vector<4x24xf32>
    %288 = arith.addf %286, %287 : vector<4x24xf32>
    %289 = math.tanh %288 : vector<4x24xf32>
    %290 = arith.mulf %283, %289 : vector<4x24xf32>
    %291 = arith.addf %164, %227 : vector<4x24xf32>
    %292 = arith.addf %291, %290 : vector<4x24xf32>
    %cst_92 = arith.constant 0.333333343 : f32
    %293 = vector.broadcast %cst_92 : f32 to vector<4x24xf32>
    %294 = arith.mulf %292, %293 : vector<4x24xf32>
    %cst_93 = arith.constant dense<0.000000e+00> : vector<4x4xf32>
    %295 = tpu.matmul %294, %1, %cst_93 {dimension_numbers = #tpu.dot_dimension_numbers<[1], [0], [0], [1], [0, 0, 1, 1], [], []>} : vector<4x24xf32>, vector<24x4xf32>, vector<4x4xf32> -> vector<4x4xf32>
    %296 = vector.broadcast %2 : vector<1x4xf32> to vector<4x4xf32>
    %297 = arith.addf %295, %296 : vector<4x4xf32>
    %cst_94 = arith.constant 0.000000e+00 : f32
    %298 = vector.broadcast %cst_94 : f32 to vector<4x4xf32>
    %299 = arith.maximumf %297, %298 : vector<4x4xf32>
    %cst_95 = arith.constant dense<0.000000e+00> : vector<4x24xf32>
    %300 = tpu.matmul %299, %3, %cst_95 {dimension_numbers = #tpu.dot_dimension_numbers<[1], [0], [0], [1], [0, 0, 1, 1], [], []>} : vector<4x4xf32>, vector<4x24xf32>, vector<4x24xf32> -> vector<4x24xf32>
    %301 = vector.broadcast %4 : vector<1x24xf32> to vector<4x24xf32>
    %302 = arith.addf %300, %301 : vector<4x24xf32>
    %303 = arith.negf %302 : vector<4x24xf32>
    %304 = math.exp %303 : vector<4x24xf32>
    %cst_96 = arith.constant 1.000000e+00 : f32
    %305 = vector.broadcast %cst_96 : f32 to vector<4x24xf32>
    %306 = arith.addf %305, %304 : vector<4x24xf32>
    %307 = arith.divf %305, %306 : vector<4x24xf32>
    %308 = tpu.concatenate %164, %227, %290 in 1 : vector<4x24xf32>, vector<4x24xf32>, vector<4x24xf32> -> vector<4x72xf32>
    %cst_97 = arith.constant dense<0.000000e+00> : vector<4x24xf32>
    %309 = tpu.matmul %308, %5, %cst_97 {dimension_numbers = #tpu.dot_dimension_numbers<[1], [0], [0], [1], [0, 0, 1, 1], [], []>} : vector<4x72xf32>, vector<72x24xf32>, vector<4x24xf32> -> vector<4x24xf32>
    %310 = vector.broadcast %6 : vector<1x24xf32> to vector<4x24xf32>
    %311 = arith.addf %309, %310 : vector<4x24xf32>
    %312 = arith.mulf %307, %311 : vector<4x24xf32>
    %313 = arith.addf %312, %290 : vector<4x24xf32>
    %cst_98 = arith.constant dense<0.000000e+00> : vector<4x4xf32>
    %314 = tpu.matmul %313, %7, %cst_98 {dimension_numbers = #tpu.dot_dimension_numbers<[1], [0], [0], [1], [0, 0, 1, 1], [], []>} : vector<4x24xf32>, vector<24x4xf32>, vector<4x4xf32> -> vector<4x4xf32>
    %315 = vector.broadcast %8 : vector<1x4xf32> to vector<4x4xf32>
    %316 = arith.addf %314, %315 : vector<4x4xf32>
    %317 = arith.negf %316 : vector<4x4xf32>
    %318 = math.exp %317 : vector<4x4xf32>
    %cst_99 = arith.constant 1.000000e+00 : f32
    %319 = vector.broadcast %cst_99 : f32 to vector<4x4xf32>
    %320 = arith.addf %319, %318 : vector<4x4xf32>
    %321 = arith.divf %319, %320 : vector<4x4xf32>
    %c4_100 = arith.constant 4 : index
    %c0_101 = arith.constant 0 : index
    %c0_102 = arith.constant 0 : index
    %322 = vector.load %arg10[%c4_100, %c0_101, %c0_102] : memref<8x4x4xf32, #tpu.memory_space<vmem>>, vector<1x4x4xf32>
    %323 = vector.shape_cast %322 : vector<1x4x4xf32> to vector<4x4xf32>
    %324 = vector.shape_cast %321 : vector<4x4xf32> to vector<1x4x4xf32>
    tpu.vector_store %arg10[%c4_100, %c0_101, %c0_102], %324 {strides = array<i32>} : memref<8x4x4xf32, #tpu.memory_space<vmem>>, vector<1x4x4xf32>,
    %c5 = arith.constant 5 : index
    %c0_103 = arith.constant 0 : index
    %c0_104 = arith.constant 0 : index
    %325 = vector.load %arg0[%c5, %c0_103, %c0_104] : memref<8x4x96xf32, #tpu.memory_space<vmem>>, vector<1x4x96xf32>
    %326 = vector.shape_cast %325 : vector<1x4x96xf32> to vector<4x96xf32>
    %cst_105 = arith.constant dense<0.000000e+00> : vector<4x96xf32>
    %327 = tpu.matmul %290, %0, %cst_105 {dimension_numbers = #tpu.dot_dimension_numbers<[1], [0], [0], [1], [0, 0, 1, 1], [], []>} : vector<4x24xf32>, vector<24x96xf32>, vector<4x96xf32> -> vector<4x96xf32>
    %328 = arith.addf %326, %327 : vector<4x96xf32>
    %329 = vector.extract_strided_slice %328 {offsets = [0, 0], sizes = [4, 24], strides = [1, 1]} : vector<4x96xf32> to vector<4x24xf32>
    %330 = arith.negf %329 : vector<4x24xf32>
    %331 = math.exp %330 : vector<4x24xf32>
    %cst_106 = arith.constant 1.000000e+00 : f32
    %332 = vector.broadcast %cst_106 : f32 to vector<4x24xf32>
    %333 = arith.addf %332, %331 : vector<4x24xf32>
    %334 = arith.divf %332, %333 : vector<4x24xf32>
    %335 = vector.extract_strided_slice %328 {offsets = [0, 24], sizes = [4, 24], strides = [1, 1]} : vector<4x96xf32> to vector<4x24xf32>
    %336 = arith.negf %335 : vector<4x24xf32>
    %337 = math.exp %336 : vector<4x24xf32>
    %cst_107 = arith.constant 1.000000e+00 : f32
    %338 = vector.broadcast %cst_107 : f32 to vector<4x24xf32>
    %339 = arith.addf %338, %337 : vector<4x24xf32>
    %340 = arith.divf %338, %339 : vector<4x24xf32>
    %341 = vector.extract_strided_slice %328 {offsets = [0, 48], sizes = [4, 24], strides = [1, 1]} : vector<4x96xf32> to vector<4x24xf32>
    %342 = arith.negf %341 : vector<4x24xf32>
    %343 = math.exp %342 : vector<4x24xf32>
    %cst_108 = arith.constant 1.000000e+00 : f32
    %344 = vector.broadcast %cst_108 : f32 to vector<4x24xf32>
    %345 = arith.addf %344, %343 : vector<4x24xf32>
    %346 = arith.divf %344, %345 : vector<4x24xf32>
    %347 = vector.extract_strided_slice %328 {offsets = [0, 72], sizes = [4, 24], strides = [1, 1]} : vector<4x96xf32> to vector<4x24xf32>
    %348 = math.tanh %347 : vector<4x24xf32>
    %349 = arith.mulf %334, %288 : vector<4x24xf32>
    %350 = arith.mulf %340, %348 : vector<4x24xf32>
    %351 = arith.addf %349, %350 : vector<4x24xf32>
    %352 = math.tanh %351 : vector<4x24xf32>
    %353 = arith.mulf %346, %352 : vector<4x24xf32>
    %354 = arith.addf %227, %290 : vector<4x24xf32>
    %355 = arith.addf %354, %353 : vector<4x24xf32>
    %cst_109 = arith.constant 0.333333343 : f32
    %356 = vector.broadcast %cst_109 : f32 to vector<4x24xf32>
    %357 = arith.mulf %355, %356 : vector<4x24xf32>
    %cst_110 = arith.constant dense<0.000000e+00> : vector<4x4xf32>
    %358 = tpu.matmul %357, %1, %cst_110 {dimension_numbers = #tpu.dot_dimension_numbers<[1], [0], [0], [1], [0, 0, 1, 1], [], []>} : vector<4x24xf32>, vector<24x4xf32>, vector<4x4xf32> -> vector<4x4xf32>
    %359 = vector.broadcast %2 : vector<1x4xf32> to vector<4x4xf32>
    %360 = arith.addf %358, %359 : vector<4x4xf32>
    %cst_111 = arith.constant 0.000000e+00 : f32
    %361 = vector.broadcast %cst_111 : f32 to vector<4x4xf32>
    %362 = arith.maximumf %360, %361 : vector<4x4xf32>
    %cst_112 = arith.constant dense<0.000000e+00> : vector<4x24xf32>
    %363 = tpu.matmul %362, %3, %cst_112 {dimension_numbers = #tpu.dot_dimension_numbers<[1], [0], [0], [1], [0, 0, 1, 1], [], []>} : vector<4x4xf32>, vector<4x24xf32>, vector<4x24xf32> -> vector<4x24xf32>
    %364 = vector.broadcast %4 : vector<1x24xf32> to vector<4x24xf32>
    %365 = arith.addf %363, %364 : vector<4x24xf32>
    %366 = arith.negf %365 : vector<4x24xf32>
    %367 = math.exp %366 : vector<4x24xf32>
    %cst_113 = arith.constant 1.000000e+00 : f32
    %368 = vector.broadcast %cst_113 : f32 to vector<4x24xf32>
    %369 = arith.addf %368, %367 : vector<4x24xf32>
    %370 = arith.divf %368, %369 : vector<4x24xf32>
    %371 = tpu.concatenate %227, %290, %353 in 1 : vector<4x24xf32>, vector<4x24xf32>, vector<4x24xf32> -> vector<4x72xf32>
    %cst_114 = arith.constant dense<0.000000e+00> : vector<4x24xf32>
    %372 = tpu.matmul %371, %5, %cst_114 {dimension_numbers = #tpu.dot_dimension_numbers<[1], [0], [0], [1], [0, 0, 1, 1], [], []>} : vector<4x72xf32>, vector<72x24xf32>, vector<4x24xf32> -> vector<4x24xf32>
    %373 = vector.broadcast %6 : vector<1x24xf32> to vector<4x24xf32>
    %374 = arith.addf %372, %373 : vector<4x24xf32>
    %375 = arith.mulf %370, %374 : vector<4x24xf32>
    %376 = arith.addf %375, %353 : vector<4x24xf32>
    %cst_115 = arith.constant dense<0.000000e+00> : vector<4x4xf32>
    %377 = tpu.matmul %376, %7, %cst_115 {dimension_numbers = #tpu.dot_dimension_numbers<[1], [0], [0], [1], [0, 0, 1, 1], [], []>} : vector<4x24xf32>, vector<24x4xf32>, vector<4x4xf32> -> vector<4x4xf32>
    %378 = vector.broadcast %8 : vector<1x4xf32> to vector<4x4xf32>
    %379 = arith.addf %377, %378 : vector<4x4xf32>
    %380 = arith.negf %379 : vector<4x4xf32>
    %381 = math.exp %380 : vector<4x4xf32>
    %cst_116 = arith.constant 1.000000e+00 : f32
    %382 = vector.broadcast %cst_116 : f32 to vector<4x4xf32>
    %383 = arith.addf %382, %381 : vector<4x4xf32>
    %384 = arith.divf %382, %383 : vector<4x4xf32>
    %c5_117 = arith.constant 5 : index
    %c0_118 = arith.constant 0 : index
    %c0_119 = arith.constant 0 : index
    %385 = vector.load %arg10[%c5_117, %c0_118, %c0_119] : memref<8x4x4xf32, #tpu.memory_space<vmem>>, vector<1x4x4xf32>
    %386 = vector.shape_cast %385 : vector<1x4x4xf32> to vector<4x4xf32>
    %387 = vector.shape_cast %384 : vector<4x4xf32> to vector<1x4x4xf32>
    tpu.vector_store %arg10[%c5_117, %c0_118, %c0_119], %387 {strides = array<i32>} : memref<8x4x4xf32, #tpu.memory_space<vmem>>, vector<1x4x4xf32>,
    %c6 = arith.constant 6 : index
    %c0_120 = arith.constant 0 : index
    %c0_121 = arith.constant 0 : index
    %388 = vector.load %arg0[%c6, %c0_120, %c0_121] : memref<8x4x96xf32, #tpu.memory_space<vmem>>, vector<1x4x96xf32>
    %389 = vector.shape_cast %388 : vector<1x4x96xf32> to vector<4x96xf32>
    %cst_122 = arith.constant dense<0.000000e+00> : vector<4x96xf32>
    %390 = tpu.matmul %353, %0, %cst_122 {dimension_numbers = #tpu.dot_dimension_numbers<[1], [0], [0], [1], [0, 0, 1, 1], [], []>} : vector<4x24xf32>, vector<24x96xf32>, vector<4x96xf32> -> vector<4x96xf32>
    %391 = arith.addf %389, %390 : vector<4x96xf32>
    %392 = vector.extract_strided_slice %391 {offsets = [0, 0], sizes = [4, 24], strides = [1, 1]} : vector<4x96xf32> to vector<4x24xf32>
    %393 = arith.negf %392 : vector<4x24xf32>
    %394 = math.exp %393 : vector<4x24xf32>
    %cst_123 = arith.constant 1.000000e+00 : f32
    %395 = vector.broadcast %cst_123 : f32 to vector<4x24xf32>
    %396 = arith.addf %395, %394 : vector<4x24xf32>
    %397 = arith.divf %395, %396 : vector<4x24xf32>
    %398 = vector.extract_strided_slice %391 {offsets = [0, 24], sizes = [4, 24], strides = [1, 1]} : vector<4x96xf32> to vector<4x24xf32>
    %399 = arith.negf %398 : vector<4x24xf32>
    %400 = math.exp %399 : vector<4x24xf32>
    %cst_124 = arith.constant 1.000000e+00 : f32
    %401 = vector.broadcast %cst_124 : f32 to vector<4x24xf32>
    %402 = arith.addf %401, %400 : vector<4x24xf32>
    %403 = arith.divf %401, %402 : vector<4x24xf32>
    %404 = vector.extract_strided_slice %391 {offsets = [0, 48], sizes = [4, 24], strides = [1, 1]} : vector<4x96xf32> to vector<4x24xf32>
    %405 = arith.negf %404 : vector<4x24xf32>
    %406 = math.exp %405 : vector<4x24xf32>
    %cst_125 = arith.constant 1.000000e+00 : f32
    %407 = vector.broadcast %cst_125 : f32 to vector<4x24xf32>
    %408 = arith.addf %407, %406 : vector<4x24xf32>
    %409 = arith.divf %407, %408 : vector<4x24xf32>
    %410 = vector.extract_strided_slice %391 {offsets = [0, 72], sizes = [4, 24], strides = [1, 1]} : vector<4x96xf32> to vector<4x24xf32>
    %411 = math.tanh %410 : vector<4x24xf32>
    %412 = arith.mulf %397, %351 : vector<4x24xf32>
    %413 = arith.mulf %403, %411 : vector<4x24xf32>
    %414 = arith.addf %412, %413 : vector<4x24xf32>
    %415 = math.tanh %414 : vector<4x24xf32>
    %416 = arith.mulf %409, %415 : vector<4x24xf32>
    %417 = arith.addf %290, %353 : vector<4x24xf32>
    %418 = arith.addf %417, %416 : vector<4x24xf32>
    %cst_126 = arith.constant 0.333333343 : f32
    %419 = vector.broadcast %cst_126 : f32 to vector<4x24xf32>
    %420 = arith.mulf %418, %419 : vector<4x24xf32>
    %cst_127 = arith.constant dense<0.000000e+00> : vector<4x4xf32>
    %421 = tpu.matmul %420, %1, %cst_127 {dimension_numbers = #tpu.dot_dimension_numbers<[1], [0], [0], [1], [0, 0, 1, 1], [], []>} : vector<4x24xf32>, vector<24x4xf32>, vector<4x4xf32> -> vector<4x4xf32>
    %422 = vector.broadcast %2 : vector<1x4xf32> to vector<4x4xf32>
    %423 = arith.addf %421, %422 : vector<4x4xf32>
    %cst_128 = arith.constant 0.000000e+00 : f32
    %424 = vector.broadcast %cst_128 : f32 to vector<4x4xf32>
    %425 = arith.maximumf %423, %424 : vector<4x4xf32>
    %cst_129 = arith.constant dense<0.000000e+00> : vector<4x24xf32>
    %426 = tpu.matmul %425, %3, %cst_129 {dimension_numbers = #tpu.dot_dimension_numbers<[1], [0], [0], [1], [0, 0, 1, 1], [], []>} : vector<4x4xf32>, vector<4x24xf32>, vector<4x24xf32> -> vector<4x24xf32>
    %427 = vector.broadcast %4 : vector<1x24xf32> to vector<4x24xf32>
    %428 = arith.addf %426, %427 : vector<4x24xf32>
    %429 = arith.negf %428 : vector<4x24xf32>
    %430 = math.exp %429 : vector<4x24xf32>
    %cst_130 = arith.constant 1.000000e+00 : f32
    %431 = vector.broadcast %cst_130 : f32 to vector<4x24xf32>
    %432 = arith.addf %431, %430 : vector<4x24xf32>
    %433 = arith.divf %431, %432 : vector<4x24xf32>
    %434 = tpu.concatenate %290, %353, %416 in 1 : vector<4x24xf32>, vector<4x24xf32>, vector<4x24xf32> -> vector<4x72xf32>
    %cst_131 = arith.constant dense<0.000000e+00> : vector<4x24xf32>
    %435 = tpu.matmul %434, %5, %cst_131 {dimension_numbers = #tpu.dot_dimension_numbers<[1], [0], [0], [1], [0, 0, 1, 1], [], []>} : vector<4x72xf32>, vector<72x24xf32>, vector<4x24xf32> -> vector<4x24xf32>
    %436 = vector.broadcast %6 : vector<1x24xf32> to vector<4x24xf32>
    %437 = arith.addf %435, %436 : vector<4x24xf32>
    %438 = arith.mulf %433, %437 : vector<4x24xf32>
    %439 = arith.addf %438, %416 : vector<4x24xf32>
    %cst_132 = arith.constant dense<0.000000e+00> : vector<4x4xf32>
    %440 = tpu.matmul %439, %7, %cst_132 {dimension_numbers = #tpu.dot_dimension_numbers<[1], [0], [0], [1], [0, 0, 1, 1], [], []>} : vector<4x24xf32>, vector<24x4xf32>, vector<4x4xf32> -> vector<4x4xf32>
    %441 = vector.broadcast %8 : vector<1x4xf32> to vector<4x4xf32>
    %442 = arith.addf %440, %441 : vector<4x4xf32>
    %443 = arith.negf %442 : vector<4x4xf32>
    %444 = math.exp %443 : vector<4x4xf32>
    %cst_133 = arith.constant 1.000000e+00 : f32
    %445 = vector.broadcast %cst_133 : f32 to vector<4x4xf32>
    %446 = arith.addf %445, %444 : vector<4x4xf32>
    %447 = arith.divf %445, %446 : vector<4x4xf32>
    %c6_134 = arith.constant 6 : index
    %c0_135 = arith.constant 0 : index
    %c0_136 = arith.constant 0 : index
    %448 = vector.load %arg10[%c6_134, %c0_135, %c0_136] : memref<8x4x4xf32, #tpu.memory_space<vmem>>, vector<1x4x4xf32>
    %449 = vector.shape_cast %448 : vector<1x4x4xf32> to vector<4x4xf32>
    %450 = vector.shape_cast %447 : vector<4x4xf32> to vector<1x4x4xf32>
    tpu.vector_store %arg10[%c6_134, %c0_135, %c0_136], %450 {strides = array<i32>} : memref<8x4x4xf32, #tpu.memory_space<vmem>>, vector<1x4x4xf32>,
    %c7 = arith.constant 7 : index
    %c0_137 = arith.constant 0 : index
    %c0_138 = arith.constant 0 : index
    %451 = vector.load %arg0[%c7, %c0_137, %c0_138] : memref<8x4x96xf32, #tpu.memory_space<vmem>>, vector<1x4x96xf32>
    %452 = vector.shape_cast %451 : vector<1x4x96xf32> to vector<4x96xf32>
    %cst_139 = arith.constant dense<0.000000e+00> : vector<4x96xf32>
    %453 = tpu.matmul %416, %0, %cst_139 {dimension_numbers = #tpu.dot_dimension_numbers<[1], [0], [0], [1], [0, 0, 1, 1], [], []>} : vector<4x24xf32>, vector<24x96xf32>, vector<4x96xf32> -> vector<4x96xf32>
    %454 = arith.addf %452, %453 : vector<4x96xf32>
    %455 = vector.extract_strided_slice %454 {offsets = [0, 0], sizes = [4, 24], strides = [1, 1]} : vector<4x96xf32> to vector<4x24xf32>
    %456 = arith.negf %455 : vector<4x24xf32>
    %457 = math.exp %456 : vector<4x24xf32>
    %cst_140 = arith.constant 1.000000e+00 : f32
    %458 = vector.broadcast %cst_140 : f32 to vector<4x24xf32>
    %459 = arith.addf %458, %457 : vector<4x24xf32>
    %460 = arith.divf %458, %459 : vector<4x24xf32>
    %461 = vector.extract_strided_slice %454 {offsets = [0, 24], sizes = [4, 24], strides = [1, 1]} : vector<4x96xf32> to vector<4x24xf32>
    %462 = arith.negf %461 : vector<4x24xf32>
    %463 = math.exp %462 : vector<4x24xf32>
    %cst_141 = arith.constant 1.000000e+00 : f32
    %464 = vector.broadcast %cst_141 : f32 to vector<4x24xf32>
    %465 = arith.addf %464, %463 : vector<4x24xf32>
    %466 = arith.divf %464, %465 : vector<4x24xf32>
    %467 = vector.extract_strided_slice %454 {offsets = [0, 48], sizes = [4, 24], strides = [1, 1]} : vector<4x96xf32> to vector<4x24xf32>
    %468 = arith.negf %467 : vector<4x24xf32>
    %469 = math.exp %468 : vector<4x24xf32>
    %cst_142 = arith.constant 1.000000e+00 : f32
    %470 = vector.broadcast %cst_142 : f32 to vector<4x24xf32>
    %471 = arith.addf %470, %469 : vector<4x24xf32>
    %472 = arith.divf %470, %471 : vector<4x24xf32>
    %473 = vector.extract_strided_slice %454 {offsets = [0, 72], sizes = [4, 24], strides = [1, 1]} : vector<4x96xf32> to vector<4x24xf32>
    %474 = math.tanh %473 : vector<4x24xf32>
    %475 = arith.mulf %460, %414 : vector<4x24xf32>
    %476 = arith.mulf %466, %474 : vector<4x24xf32>
    %477 = arith.addf %475, %476 : vector<4x24xf32>
    %478 = math.tanh %477 : vector<4x24xf32>
    %479 = arith.mulf %472, %478 : vector<4x24xf32>
    %480 = arith.addf %353, %416 : vector<4x24xf32>
    %481 = arith.addf %480, %479 : vector<4x24xf32>
    %cst_143 = arith.constant 0.333333343 : f32
    %482 = vector.broadcast %cst_143 : f32 to vector<4x24xf32>
    %483 = arith.mulf %481, %482 : vector<4x24xf32>
    %cst_144 = arith.constant dense<0.000000e+00> : vector<4x4xf32>
    %484 = tpu.matmul %483, %1, %cst_144 {dimension_numbers = #tpu.dot_dimension_numbers<[1], [0], [0], [1], [0, 0, 1, 1], [], []>} : vector<4x24xf32>, vector<24x4xf32>, vector<4x4xf32> -> vector<4x4xf32>
    %485 = vector.broadcast %2 : vector<1x4xf32> to vector<4x4xf32>
    %486 = arith.addf %484, %485 : vector<4x4xf32>
    %cst_145 = arith.constant 0.000000e+00 : f32
    %487 = vector.broadcast %cst_145 : f32 to vector<4x4xf32>
    %488 = arith.maximumf %486, %487 : vector<4x4xf32>
    %cst_146 = arith.constant dense<0.000000e+00> : vector<4x24xf32>
    %489 = tpu.matmul %488, %3, %cst_146 {dimension_numbers = #tpu.dot_dimension_numbers<[1], [0], [0], [1], [0, 0, 1, 1], [], []>} : vector<4x4xf32>, vector<4x24xf32>, vector<4x24xf32> -> vector<4x24xf32>
    %490 = vector.broadcast %4 : vector<1x24xf32> to vector<4x24xf32>
    %491 = arith.addf %489, %490 : vector<4x24xf32>
    %492 = arith.negf %491 : vector<4x24xf32>
    %493 = math.exp %492 : vector<4x24xf32>
    %cst_147 = arith.constant 1.000000e+00 : f32
    %494 = vector.broadcast %cst_147 : f32 to vector<4x24xf32>
    %495 = arith.addf %494, %493 : vector<4x24xf32>
    %496 = arith.divf %494, %495 : vector<4x24xf32>
    %497 = tpu.concatenate %353, %416, %479 in 1 : vector<4x24xf32>, vector<4x24xf32>, vector<4x24xf32> -> vector<4x72xf32>
    %cst_148 = arith.constant dense<0.000000e+00> : vector<4x24xf32>
    %498 = tpu.matmul %497, %5, %cst_148 {dimension_numbers = #tpu.dot_dimension_numbers<[1], [0], [0], [1], [0, 0, 1, 1], [], []>} : vector<4x72xf32>, vector<72x24xf32>, vector<4x24xf32> -> vector<4x24xf32>
    %499 = vector.broadcast %6 : vector<1x24xf32> to vector<4x24xf32>
    %500 = arith.addf %498, %499 : vector<4x24xf32>
    %501 = arith.mulf %496, %500 : vector<4x24xf32>
    %502 = arith.addf %501, %479 : vector<4x24xf32>
    %cst_149 = arith.constant dense<0.000000e+00> : vector<4x4xf32>
    %503 = tpu.matmul %502, %7, %cst_149 {dimension_numbers = #tpu.dot_dimension_numbers<[1], [0], [0], [1], [0, 0, 1, 1], [], []>} : vector<4x24xf32>, vector<24x4xf32>, vector<4x4xf32> -> vector<4x4xf32>
    %504 = vector.broadcast %8 : vector<1x4xf32> to vector<4x4xf32>
    %505 = arith.addf %503, %504 : vector<4x4xf32>
    %506 = arith.negf %505 : vector<4x4xf32>
    %507 = math.exp %506 : vector<4x4xf32>
    %cst_150 = arith.constant 1.000000e+00 : f32
    %508 = vector.broadcast %cst_150 : f32 to vector<4x4xf32>
    %509 = arith.addf %508, %507 : vector<4x4xf32>
    %510 = arith.divf %508, %509 : vector<4x4xf32>
    %c7_151 = arith.constant 7 : index
    %c0_152 = arith.constant 0 : index
    %c0_153 = arith.constant 0 : index
    %511 = vector.load %arg10[%c7_151, %c0_152, %c0_153] : memref<8x4x4xf32, #tpu.memory_space<vmem>>, vector<1x4x4xf32>
    %512 = vector.shape_cast %511 : vector<1x4x4xf32> to vector<4x4xf32>
    %513 = vector.shape_cast %510 : vector<4x4xf32> to vector<1x4x4xf32>
    tpu.vector_store %arg10[%c7_151, %c0_152, %c0_153], %513 {strides = array<i32>} : memref<8x4x4xf32, #tpu.memory_space<vmem>>, vector<1x4x4xf32>,
    return
  }
}

</mosaic_0001>

<bundles_post_ra>
// kernel: tpu_custom_call.1
= control target key start
LH: loop header
LB: loop body
LE: loop exit
PB: predicated region body
PF: predicated region fallthrough
CT: control target
= control target key end

     0   :  { %v2008_v3 = vmov 0.0   ;;  %s2009_s21 = smov 80   ;;  %s2010_s22 = smov 104   ;;  %vm59_vm4 = vcmask 195584   ;;  %vm202_vm5 = vcmask 392192   ;;  %vm207_vm6 = vcmask 588800   ;;  %s2752_s1 = inlined_call_operand.vmem [shape: f32[24,96], index: 1, kind: input, shape index: {}]   ;;  %s2753_s0 = inlined_call_operand.vmem [shape: f32[8,4,96], index: 0, kind: input, shape index: {}]   ;;  %s2754_s2 = inlined_call_operand.vmem [shape: f32[24,4], index: 2, kind: input, shape index: {}]   ;;  %s2755_s6 = inlined_call_operand.vmem [shape: f32[72,24], index: 6, kind: input, shape index: {}]   ;;  %s2756_s3 = inlined_call_operand.vmem [shape: f32[1,4], index: 3, kind: input, shape index: {}]   ;;  %s2757_s7 = inlined_call_operand.vmem [shape: f32[1,24], index: 7, kind: input, shape index: {}]   ;;  %s2758_s4 = inlined_call_operand.vmem [shape: f32[4,24], index: 4, kind: input, shape index: {}]   ;;  %s2759_s5 = inlined_call_operand.vmem [shape: f32[1,24], index: 5, kind: input, shape index: {}]   ;;  %s2760_s9 = inlined_call_operand.vmem [shape: f32[1,4], index: 9, kind: input, shape index: {}]   ;;  %s2761_s8 = inlined_call_operand.vmem [shape: f32[24,4], index: 8, kind: input, shape index: {}]   ;;  %s2762_s10 = inlined_call_operand.vmem [shape: f32[8,4,4], index: 10, kind: output, shape index: {}]  }
   0x1   :  { %v2070_v0 = vld [vmem:[%s2752_s1 + $0x10] sm:$0xff]  ;;  %v2075_v1 = vld [vmem:[%s2752_s1 + $0x8] sm:$0xff]  ;;  %v2081_v2 = vld [vmem:[%s2752_s1] sm:$0xff]  ;;  %s2011_s23 = smov 48   ;;  %vm159_vm7 = vcmask 1043456   ;;  %vm155_vm8 = vcmask 31744  }
   0x2   :  { %76 = vmatpush.msra.mxu0 %v2070_v0  ;;  %v58_v4 = vld [vmem:[%s2753_s0] sm:$0xf]  ;;  %v2100_v27 = vld [vmem:[%s2754_s2 + $0x10] sm:$0xff]  ;;  %v2105_v28 = vld [vmem:[%s2754_s2 + $0x8] sm:$0xff] }
   0x3   :  { %144 = vmatpush.msra.mxu3 %v2100_v27  ;;  %v2111_v29 = vld [vmem:[%s2755_s6 + $0x40] sm:$0xff]  ;;  %366 = vmatpush.msra.mxu1 %v2100_v27  ;;  %v2124_v31 = vld [vmem:[%s2755_s6 + $0x38] sm:$0xff]  ;;  %v2132_v32 = vld [vmem:[%s2755_s6 + $0x30] sm:$0xff] }
   0x4   :  { %77 = vmatpush.msra.mxu0 %v2075_v1  ;;  %v2117_v30 = vld [vmem:[%s2754_s2] sm:$0xff]  ;;  %v2140_v33 = vld [vmem:[%s2755_s6 + $0x28] sm:$0xff]  ;;  %v2162_v38 = vld [vmem:[%s2755_s6 + $0x18] sm:$0xff] }
   0x5   :  { %145 = vmatpush.msra.mxu3 %v2105_v28  ;;  %367 = vmatpush.msra.mxu1 %v2105_v28  ;;  %v2147_v34 = vld [vmem:[%s2755_s6 + $0x20] sm:$0xff]  ;;  %v2167_v39 = vld [vmem:[%s2755_s6 + $0x10] sm:$0xff]  ;;  %v2174_v40 = vld [vmem:[%s2755_s6 + $0x8] sm:$0xff] }
   0x6   :  { %78 = vmatpush.msra.mxu0 %v2081_v2  ;;  %v2181_v41 = vld [vmem:[%s2755_s6] sm:$0xff] }
   0x7   :  { %79 = vmatmul.f32.vlgmr.msra.gmra.mxu0 %v2008_v3  ;;  %146 = vmatpush.msra.mxu3 %v2117_v30  ;;  %v2204_v45 = vld [vmem:[%s2758_s4] sm:$0xf]  ;;  %v1772_v50 = vld [vmem:[%s2753_s0 + $0x4] sm:$0xf] }
   0x8   :  { %301 = vmatpush.msrb.mxu0 %v2070_v0  ;;  %368 = vmatpush.msra.mxu1 %v2117_v30  ;;  %v2211_v46 = vld [vmem:[%s2756_s3] ss:$0 sm:$0xff] }
   0x9   :  { %218 = vmatpush.msrb.mxu3 %v2111_v29  ;;  %1766 = vmatpush.msk.msra.mxu2 %vm159_vm7, %v2204_v45 }
   0xa   :  { %302 = vmatpush.msrb.mxu0 %v2075_v1 }
   0xb   :  { %219 = vmatpush.msrb.mxu3 %v2124_v31 }
   0xc   :  { %303 = vmatpush.msrb.mxu0 %v2081_v2 }
   0xd   :  { %220 = vmatpush.msrb.mxu3 %v2132_v32 }
   0xe   :  { %431 = vmatpush.msra.mxu0 %v2111_v29 }
   0xf   :  { %221 = vmatpush.msrb.mxu3 %v2140_v33 }
  0x10   :  { %432 = vmatpush.msra.mxu0 %v2124_v31 }
  0x11   :  { %222 = vmatpush.msrb.mxu3 %v2147_v34 }
  0x12   :  { %433 = vmatpush.msra.mxu0 %v2132_v32 }
  0x13   :  { %223 = vmatpush.msrb.mxu3 %v2162_v38 }
  0x14   :  { %434 = vmatpush.msra.mxu0 %v2140_v33 }
  0x15   :  { %224 = vmatpush.msrb.mxu3 %v2167_v39 }
  0x16   :  { %435 = vmatpush.msra.mxu0 %v2147_v34 }
  0x17   :  { %225 = vmatpush.msrb.mxu3 %v2174_v40 }
  0x18   :  { %436 = vmatpush.msra.mxu0 %v2162_v38 }
  0x19   :  { %226 = vmatpush.msrb.mxu3 %v2181_v41 }
  0x1a   :  { %437 = vmatpush.msra.mxu0 %v2167_v39 }
  0x1c   :  { %438 = vmatpush.msra.mxu0 %v2174_v40 }
  0x1e   :  { %439 = vmatpush.msra.mxu0 %v2181_v41 }
  0x84   :  { %v80_v5 = vpop.f32.mrf.mxu0 }
  0x85   :  { %v83_v6 = vadd.f32 %v80_v5, %v58_v4 }
  0x87   :  { %1857 = vtanh.f32 %v83_v6  ;;  %v1764_v8 = vmul.f32 -1.442695, %v83_v6 }
  0x89   :  { %1859 = vpow2.f32 %v1764_v8  ;;  %v2226_v8 = vld [vmem:[%s2761_s8 + $0x10] sm:$0xff] }
  0x8a   :  { %256 = vmatpush.msrb.mxu2 %v2226_v8  ;;  %466 = vmatpush.msrb.mxu1 %v2226_v8 }
  0x8d   :  { %v1858_v7 = vpop.eup %1857 }
  0x8e   :  { %106 = vrot.lane.b32.xlu0 %v1858_v7, %s2009_s21 }
  0x8f   :  { %v1860_v9 = vpop.eup %1859 }
  0x90   :  { %v87_v10 = vadd.f32 1.0, %v1860_v9  ;;  %v2231_v9 = vld [vmem:[%s2761_s8 + $0x8] sm:$0xff] }
  0x91   :  { %257 = vmatpush.msrb.mxu2 %v2231_v9  ;;  %467 = vmatpush.msrb.mxu1 %v2231_v9 }
  0x92   :  { %1861 = vrcp.f32 %v87_v10  ;;  %v99_v16 = vand.u32 2147483648, %v87_v10  ;;  %vm93_vm1 = vweird.f32 %v87_v10  ;;  %v97_v17 = vand.u32 2147483647, %v87_v10 }
  0x94   :  { %v100_v19 = vor.u32 1.1754944e-38, %v99_v16  ;;  %vm98_vm3 = vcmp.eq.f32.partialorder %v97_v17, 8.507059e+37 }
  0x98   :  { %v1862_v11 = vpop.eup %1861 }
  0x99   :  { %v89_v12 = vmul.f32 %v1862_v11, %v87_v10  ;;  %vm94_vm0 = vweird.f32 %v1862_v11  ;;  %v2238_v10 = vld [vmem:[%s2761_s8] sm:$0xff] }
  0x9a   :  { %vm95_vm2 = vmor %vm93_vm1, %vm94_vm0  ;;  %258 = vmatpush.msrb.mxu2 %v2238_v10  ;;  %468 = vmatpush.msrb.mxu1 %v2238_v10 }
  0x9b   :  { %v90_v13 = vsub.f32 1.0, %v89_v12 }
  0x9d   :  { %v91_v14 = vmul.f32 %v1862_v11, %v90_v13 }
  0x9f   :  { %v92_v15 = vadd.f32 %v1862_v11, %v91_v14 }
  0xa1   :  { %v96_v18 = vsel %vm95_vm2, %v1862_v11, %v92_v15  ;;  %v2246_v11 = vld [vmem:[%s2759_s5] ss:$0 sm:$0xff] }
  0xa2   :  { %v101_v21 = vsel %vm98_vm3, %v100_v19, %v96_v18 }
  0xa3   :  { %v104_v23 = vmul.f32 0.0, %v101_v21 }
 0x100   :  { %v107_v20 = vpop.permute.xlu0 %106 }
 0x101   :  { %v109_v22 = vmul.f32 %v107_v20, %v101_v21 }
 0x103   :  { %111 = vrot.lane.b32.xlu0 %v109_v22, %s2010_s22 }
 0x175   :  { %v112_v24 = vpop.permute.xlu0 %111 }
 0x176   :  { %v2093_v25 = vadd.f32 %v112_v24, %v104_v23 }
 0x178   :  { %1863 = vtanh.f32 %v2093_v25 }
 0x17e   :  { %v1864_v26 = vpop.eup %1863 }
 0x17f   :  { %117 = vrot.lane.b32.xlu1 %v1864_v26, %s2011_s23 }
 0x1f1   :  { %v118_v35 = vpop.permute.xlu1 %117 }
 0x1f2   :  { %v2153_v36 = vmul.f32 %v118_v35, %v101_v21  ;;  %v2258_v21 = vld [vmem:[%s2757_s7] ss:$0 sm:$0xff] }
 0x1f4   :  { %233 = vrot.lane.b32.xlu1 %v2153_v36, %s2009_s21  ;;  %v122_v37 = vmul.f32 0.33333334, %v2153_v36  ;;  %v203_v43 = vsel %vm202_vm5, 0.0, %v2153_v36 }
 0x1f6   :  { %127 = vrot.lane.b32.xlu2 %v122_v37, %s2009_s21 }
 0x250   :  { %v128_v42 = vpop.permute.xlu2 %127 }
 0x251   :  { %1765 = vmatmul.msk.f32.vlgmr.msra.gmra.mxu3 %vm59_vm4, %v128_v42 }
 0x252   :  { %577 = vmatpush.msra.mxu3 %v2100_v27 }
 0x254   :  { %578 = vmatpush.msra.mxu3 %v2105_v28 }
 0x256   :  { %579 = vmatpush.msra.mxu3 %v2117_v30 }
 0x259   :  { %1769 = vmatmul.msk.f32.vlgmr.msrb.gmra.mxu3 %vm207_vm6, %v203_v43 }
 0x25a   :  { %677 = vmatpush.msrb.mxu3 %v2226_v8 }
 0x25c   :  { %678 = vmatpush.msrb.mxu3 %v2231_v9 }
 0x25e   :  { %679 = vmatpush.msrb.mxu3 %v2238_v10 }
 0x266   :  { %v2194_v44 = vpop.permute.xlu1 %233 }
 0x267   :  { %1773 = vmatmul.msk.f32.vlgmr.msrb.gmra.mxu0 %vm59_vm4, %v2194_v44 }
 0x268   :  { %788 = vmatpush.msrb.mxu0 %v2100_v27 }
 0x26a   :  { %789 = vmatpush.msrb.mxu0 %v2105_v28 }
 0x26c   :  { %790 = vmatpush.msrb.mxu0 %v2117_v30 }
 0x2d4   :  { %v148_v47 = vpop.f32.mrf.mxu3 }
 0x2d5   :  { %v149_v48 = vadd.f32 %v2211_v46, %v148_v47 }
 0x2d7   :  { %v151_v49 = vmax.f32 %v149_v48, 0.0 }
 0x2d9   :  { %1767 = vmatmul.msk.f32.vlgmr.msra.gmra.mxu2 %vm155_vm8, %v151_v49 }
 0x2da   :  { %1776 = vmatpush.msk.msra.mxu2 %vm159_vm7, %v2204_v45 }
 0x2dc   :  { %v228_v24 = vpop.f32.mrf.mxu3 }
 0x2dd   :  { %v229_v37 = vadd.f32 %v2258_v21, %v228_v24 }
 0x2e4   :  { %v305_v51 = vpop.f32.mrf.mxu0 }
 0x2e5   :  { %v308_v52 = vadd.f32 %v1772_v50, %v305_v51 }
 0x2e7   :  { %1865 = vtanh.f32 %v308_v52  ;;  %v1774_v54 = vmul.f32 -1.442695, %v308_v52 }
 0x2e9   :  { %1867 = vpow2.f32 %v1774_v54 }
 0x2ed   :  { %v1866_v53 = vpop.eup %1865 }
 0x2ee   :  { %331 = vrot.lane.b32.xlu2 %v1866_v53, %s2009_s21  ;;  %v2275_v53 = vld [vmem:[%s2760_s9] ss:$0 sm:$0xff] }
 0x2ef   :  { %v1868_v55 = vpop.eup %1867 }
 0x2f0   :  { %v312_v56 = vadd.f32 1.0, %v1868_v55 }
 0x2f2   :  { %1869 = vrcp.f32 %v312_v56  ;;  %v324_v62 = vand.u32 2147483648, %v312_v56  ;;  %vm318_vm10 = vweird.f32 %v312_v56  ;;  %v322_v63 = vand.u32 2147483647, %v312_v56 }
 0x2f4   :  { %v325_v4 = vor.u32 1.1754944e-38, %v324_v62  ;;  %vm323_vm12 = vcmp.eq.f32.partialorder %v322_v63, 8.507059e+37 }
 0x2f8   :  { %v1870_v57 = vpop.eup %1869 }
 0x2f9   :  { %v314_v58 = vmul.f32 %v1870_v57, %v312_v56  ;;  %vm319_vm9 = vweird.f32 %v1870_v57 }
 0x2fa   :  { %vm320_vm11 = vmor %vm318_vm10, %vm319_vm9  ;;  %vm282_vm9 = vcmask 27648  }
 0x2fb   :  { %v315_v59 = vsub.f32 1.0, %v314_v58 }
 0x2fd   :  { %v316_v60 = vmul.f32 %v1870_v57, %v315_v59 }
 0x2ff   :  { %v317_v61 = vadd.f32 %v1870_v57, %v316_v60 }
 0x301   :  { %v321_v3 = vsel %vm320_vm11, %v1870_v57, %v317_v61 }
 0x302   :  { %v2219_v5 = vsel %vm323_vm12, %v325_v4, %v321_v3 }
 0x303   :  { %v329_v49 = vmul.f32 %v2219_v5, %v2093_v25 }
 0x348   :  { %v332_v6 = vpop.permute.xlu2 %331 }
 0x349   :  { %v334_v7 = vmul.f32 %v332_v6, %v2219_v5 }
 0x34b   :  { %336 = vrot.lane.b32.xlu0 %v334_v7, %s2010_s22 }
 0x35c   :  { %v180_v12 = vpop.f32.mrf.mxu2 }
 0x35d   :  { %v181_v13 = vadd.f32 %v2246_v11, %v180_v12 }
 0x35f   :  { %v1768_v14 = vmul.f32 -1.442695, %v181_v13 }
 0x361   :  { %1871 = vpow2.f32 %v1768_v14 }
 0x367   :  { %v1872_v15 = vpop.eup %1871 }
 0x368   :  { %v186_v16 = vadd.f32 1.0, %v1872_v15 }
 0x36a   :  { %1873 = vrcp.f32 %v186_v16  ;;  %v198_v20 = vand.u32 2147483648, %v186_v16  ;;  %v196_v23 = vand.u32 2147483647, %v186_v16  ;;  %vm192_vm14 = vweird.f32 %v186_v16 }
 0x36c   :  { %v199_v35 = vor.u32 1.1754944e-38, %v198_v20  ;;  %vm197_vm0 = vcmp.eq.f32.partialorder %v196_v23, 8.507059e+37 }
 0x370   :  { %v1874_v17 = vpop.eup %1873 }
 0x371   :  { %v188_v18 = vmul.f32 %v1874_v17, %v186_v16  ;;  %vm193_vm13 = vweird.f32 %v1874_v17 }
 0x372   :  { %vm194_vm15 = vmor %vm192_vm14, %vm193_vm13 }
 0x373   :  { %v189_v19 = vsub.f32 1.0, %v188_v18 }
 0x375   :  { %v190_v22 = vmul.f32 %v1874_v17, %v189_v19 }
 0x377   :  { %v191_v26 = vadd.f32 %v1874_v17, %v190_v22  ;;  %v1783_v22 = vld [vmem:[%s2753_s0 + $0x8] sm:$0xf] }
 0x379   :  { %v195_v42 = vsel %vm194_vm15, %v1874_v17, %v191_v26 }
 0x37a   :  { %v200_v43 = vsel %vm197_vm0, %v199_v35, %v195_v42 }
 0x37b   :  { %v231_v47 = vmul.f32 %v229_v37, %v200_v43 }
 0x37d   :  { %v236_v48 = vadd.f32 %v2194_v44, %v231_v47 }
 0x37f   :  { %1770 = vmatmul.msk.f32.vlgmr.msrb.gmra.mxu2 %vm59_vm4, %v236_v48 }
 0x380   :  { %511 = vmatpush.msrb.mxu2 %v2070_v0 }
 0x382   :  { %512 = vmatpush.msrb.mxu2 %v2075_v1 }
 0x384   :  { %513 = vmatpush.msrb.mxu2 %v2081_v2 }
 0x3bd   :  { %v337_v50 = vpop.permute.xlu0 %336 }
 0x3be   :  { %v2268_v51 = vadd.f32 %v337_v50, %v329_v49 }
 0x3c0   :  { %1875 = vtanh.f32 %v2268_v51 }
 0x3c6   :  { %v1876_v52 = vpop.eup %1875 }
 0x3c7   :  { %342 = vrot.lane.b32.xlu1 %v1876_v52, %s2011_s23 }
 0x402   :  { %v260_v54 = vpop.f32.mrf.mxu2 }
 0x403   :  { %v261_v55 = vadd.f32 %v2275_v53, %v260_v54 }
 0x405   :  { %v1771_v56 = vmul.f32 -1.442695, %v261_v55 }
 0x407   :  { %1877 = vpow2.f32 %v1771_v56 }
 0x40d   :  { %v1878_v57 = vpop.eup %1877 }
 0x40e   :  { %v266_v25 = vadd.f32 1.0, %v1878_v57 }
 0x410   :  { %1879 = vrcp.f32 %v266_v25  ;;  %v278_v61 = vand.u32 2147483648, %v266_v25  ;;  %v276_v63 = vand.u32 2147483647, %v266_v25  ;;  %vm272_vm2 = vweird.f32 %v266_v25 }
 0x412   :  { %v279_v4 = vor.u32 1.1754944e-38, %v278_v61  ;;  %vm277_vm10 = vcmp.eq.f32.partialorder %v276_v63, 8.507059e+37 }
 0x416   :  { %v1880_v58 = vpop.eup %1879 }
 0x417   :  { %v268_v59 = vmul.f32 %v1880_v58, %v266_v25  ;;  %vm273_vm1 = vweird.f32 %v1880_v58 }
 0x418   :  { %vm274_vm3 = vmor %vm272_vm2, %vm273_vm1 }
 0x419   :  { %v269_v60 = vsub.f32 1.0, %v268_v59 }
 0x41b   :  { %v270_v62 = vmul.f32 %v1880_v58, %v269_v60 }
 0x41d   :  { %v271_v3 = vadd.f32 %v1880_v58, %v270_v62 }
 0x41f   :  { %v275_v6 = vsel %vm274_vm3, %v1880_v58, %v271_v3 }
 0x420   :  { %v280_v7 = vsel %vm277_vm10, %v279_v4, %v275_v6 }
 0x421   :  { %283 = vst.msk [vmem:[%s2762_s10] sm:$0xf] %vm282_vm9, %v280_v7 }
 0x439   :  { %v343_v12 = vpop.permute.xlu1 %342 }
 0x43a   :  { %v2283_v13 = vmul.f32 %v343_v12, %v2219_v5 }
 0x43c   :  { %446 = vrot.lane.b32.xlu0 %v2283_v13, %s2009_s21  ;;  %v2289_v14 = vadd.f32 %v2283_v13, %v2153_v36 }
 0x43e   :  { %v347_v15 = vmul.f32 0.33333334, %v2289_v14 }
 0x440   :  { %349 = vrot.lane.b32.xlu2 %v347_v15, %s2009_s21 }
 0x49a   :  { %v350_v16 = vpop.permute.xlu2 %349 }
 0x49b   :  { %1775 = vmatmul.msk.f32.vlgmr.msra.gmra.mxu1 %vm59_vm4, %v350_v16 }
 0x49c   :  { %1787 = vmatpush.msk.msra.mxu1 %vm159_vm7, %v2204_v45 }
 0x4ae   :  { %v2301_v19 = vpop.permute.xlu0 %446 }
 0x518   :  { %v370_v17 = vpop.f32.mrf.mxu1 }
 0x519   :  { %v371_v5 = vadd.f32 %v2211_v46, %v370_v17 }
 0x51b   :  { %v373_v18 = vmax.f32 %v371_v5, 0.0 }
 0x51d   :  { %1777 = vmatmul.msk.f32.vlgmr.msra.gmra.mxu2 %vm155_vm8, %v373_v18 }
 0x51e   :  { %642 = vmatpush.msra.mxu2 %v2111_v29 }
 0x520   :  { %643 = vmatpush.msra.mxu2 %v2124_v31 }
 0x522   :  { %644 = vmatpush.msra.mxu2 %v2132_v32 }
 0x524   :  { %645 = vmatpush.msra.mxu2 %v2140_v33 }
 0x525   :  { %1784 = vmatmul.msk.f32.vlgmr.msrb.gmra.mxu2 %vm59_vm4, %v2301_v19 }
 0x526   :  { %646 = vmatpush.msra.mxu2 %v2147_v34 }
 0x528   :  { %647 = vmatpush.msra.mxu2 %v2162_v38 }
 0x52a   :  { %648 = vmatpush.msra.mxu2 %v2167_v39 }
 0x52c   :  { %649 = vmatpush.msra.mxu2 %v2174_v40 }
 0x52e   :  { %650 = vmatpush.msra.mxu2 %v2181_v41 }
 0x530   :  { %999 = vmatpush.msrb.mxu2 %v2100_v27 }
 0x532   :  { %1000 = vmatpush.msrb.mxu2 %v2105_v28 }
 0x534   :  { %1001 = vmatpush.msrb.mxu2 %v2117_v30 }
 0x5a0   :  { %v394_v20 = vpop.f32.mrf.mxu2 }
 0x5a1   :  { %v395_v61 = vadd.f32 %v2246_v11, %v394_v20 }
 0x5a3   :  { %v1778_v63 = vmul.f32 -1.442695, %v395_v61 }
 0x5a8   :  { %v515_v23 = vpop.f32.mrf.mxu2 }
 0x5a9   :  { %v518_v24 = vadd.f32 %v1783_v22, %v515_v23 }
 0x5ab   :  { %1881 = vtanh.f32 %v518_v24  ;;  %v1785_v35 = vmul.f32 -1.442695, %v518_v24 }
 0x5ad   :  { %1883 = vpow2.f32 %v1785_v35 }
 0x5b1   :  { %v1882_v26 = vpop.eup %1881 }
 0x5b2   :  { %541 = vrot.lane.b32.xlu1 %v1882_v26, %s2009_s21 }
 0x5b3   :  { %v1884_v37 = vpop.eup %1883 }
 0x5b4   :  { %v522_v42 = vadd.f32 1.0, %v1884_v37 }
 0x5b6   :  { %1885 = vrcp.f32 %v522_v42  ;;  %v534_v52 = vand.u32 2147483648, %v522_v42  ;;  %vm528_vm12 = vweird.f32 %v522_v42  ;;  %v532_v54 = vand.u32 2147483647, %v522_v42 }
 0x5b8   :  { %v535_v56 = vor.u32 1.1754944e-38, %v534_v52  ;;  %vm533_vm14 = vcmp.eq.f32.partialorder %v532_v54, 8.507059e+37 }
 0x5ba   :  { %416 = vrot.lane.b32.xlu1 %v2153_v36, %s2010_s22 }
 0x5bc   :  { %v1886_v43 = vpop.eup %1885 }
 0x5bd   :  { %v524_v47 = vmul.f32 %v1886_v43, %v522_v42  ;;  %vm529_vm11 = vweird.f32 %v1886_v43 }
 0x5be   :  { %vm530_vm13 = vmor %vm528_vm12, %vm529_vm11 }
 0x5bf   :  { %v525_v48 = vsub.f32 1.0, %v524_v47 }
 0x5c1   :  { %v526_v49 = vmul.f32 %v1886_v43, %v525_v48 }
 0x5c3   :  { %v527_v50 = vadd.f32 %v1886_v43, %v526_v49 }
 0x5c5   :  { %v531_v55 = vsel %vm530_vm13, %v1886_v43, %v527_v50 }
 0x5c6   :  { %v536_v36 = vsel %vm533_vm14, %v535_v56, %v531_v55 }
 0x5c7   :  { %v539_v62 = vmul.f32 %v536_v36, %v2268_v51 }
 0x624   :  { %v542_v57 = vpop.permute.xlu1 %541 }
 0x625   :  { %v544_v25 = vmul.f32 %v542_v57, %v536_v36 }
 0x627   :  { %546 = vrot.lane.b32.xlu2 %v544_v25, %s2010_s22 }
 0x62c   :  { %v417_v58 = vpop.permute.xlu1 %416 }
 0x62d   :  { %v419_v59 = vsel %vm59_vm4, 0.0, %v417_v58 }
 0x62e   :  { %v420_v60 = vsel %vm202_vm5, %v419_v59, %v2283_v13 }
 0x62f   :  { %1779 = vmatmul.msk.f32.vlgmr.msra.gmra.mxu0 %vm207_vm6, %v420_v60 }
 0x630   :  { %888 = vmatpush.msra.mxu0 %v2226_v8 }
 0x632   :  { %889 = vmatpush.msra.mxu0 %v2231_v9 }
 0x634   :  { %890 = vmatpush.msra.mxu0 %v2238_v10 }
 0x681   :  { %v547_v3 = vpop.permute.xlu2 %546 }
 0x682   :  { %v2330_v4 = vadd.f32 %v547_v3, %v539_v62 }
 0x684   :  { %1887 = vtanh.f32 %v2330_v4 }
 0x685   :  { %1889 = vpow2.f32 %v1778_v63 }
 0x68a   :  { %v1888_v6 = vpop.eup %1887 }
 0x68b   :  { %v1890_v7 = vpop.eup %1889  ;;  %552 = vrot.lane.b32.xlu0 %v1888_v6, %s2011_s23 }
 0x68c   :  { %v400_v12 = vadd.f32 1.0, %v1890_v7 }
 0x68e   :  { %1891 = vrcp.f32 %v400_v12  ;;  %v412_v51 = vand.u32 2147483648, %v400_v12  ;;  %vm406_vm0 = vweird.f32 %v400_v12  ;;  %v410_v20 = vand.u32 2147483647, %v400_v12 }
 0x690   :  { %v413_v23 = vor.u32 1.1754944e-38, %v412_v51  ;;  %vm411_vm2 = vcmp.eq.f32.partialorder %v410_v20, 8.507059e+37 }
 0x694   :  { %v1892_v15 = vpop.eup %1891 }
 0x695   :  { %v402_v16 = vmul.f32 %v1892_v15, %v400_v12  ;;  %vm407_vm15 = vweird.f32 %v1892_v15 }
 0x696   :  { %vm408_vm1 = vmor %vm406_vm0, %vm407_vm15 }
 0x697   :  { %v403_v17 = vsub.f32 1.0, %v402_v16 }
 0x699   :  { %v404_v5 = vmul.f32 %v1892_v15, %v403_v17  ;;  %v1794_v17 = vld [vmem:[%s2753_s0 + $0xc] sm:$0xf] }
 0x69b   :  { %v405_v18 = vadd.f32 %v1892_v15, %v404_v5 }
 0x69d   :  { %v409_v22 = vsel %vm408_vm1, %v1892_v15, %v405_v18 }
 0x69e   :  { %v414_v35 = vsel %vm411_vm2, %v413_v23, %v409_v22 }
 0x6ac   :  { %v441_v24 = vpop.f32.mrf.mxu0 }
 0x6ad   :  { %v442_v26 = vadd.f32 %v2258_v21, %v441_v24 }
 0x6af   :  { %v444_v37 = vmul.f32 %v442_v26, %v414_v35 }
 0x6b1   :  { %v449_v42 = vadd.f32 %v2301_v19, %v444_v37 }
 0x6b3   :  { %1780 = vmatmul.msk.f32.vlgmr.msrb.gmra.mxu1 %vm59_vm4, %v449_v42 }
 0x6b4   :  { %722 = vmatpush.msrb.mxu1 %v2070_v0 }
 0x6b6   :  { %723 = vmatpush.msrb.mxu1 %v2075_v1 }
 0x6b8   :  { %724 = vmatpush.msrb.mxu1 %v2081_v2 }
 0x6fd   :  { %v553_v43 = vpop.permute.xlu0 %552 }
 0x6fe   :  { %v2340_v47 = vmul.f32 %v553_v43, %v536_v36 }
 0x700   :  { %657 = vrot.lane.b32.xlu0 %v2340_v47, %s2009_s21  ;;  %v557_v48 = vadd.f32 %v2340_v47, %v2289_v14 }
 0x702   :  { %v558_v49 = vmul.f32 0.33333334, %v557_v48 }
 0x704   :  { %560 = vrot.lane.b32.xlu2 %v558_v49, %s2009_s21 }
 0x730   :  { %v470_v50 = vpop.f32.mrf.mxu1 }
 0x731   :  { %v471_v52 = vadd.f32 %v2275_v53, %v470_v50 }
 0x733   :  { %v1781_v54 = vmul.f32 -1.442695, %v471_v52 }
 0x735   :  { %1893 = vpow2.f32 %v1781_v54 }
 0x73b   :  { %v1894_v55 = vpop.eup %1893 }
 0x73c   :  { %v476_v56 = vadd.f32 1.0, %v1894_v55 }
 0x73e   :  { %1895 = vrcp.f32 %v476_v56  ;;  %v488_v58 = vand.u32 2147483648, %v476_v56  ;;  %v486_v60 = vand.u32 2147483647, %v476_v56  ;;  %vm482_vm10 = vweird.f32 %v476_v56 }
 0x740   :  { %v489_v14 = vor.u32 1.1754944e-38, %v488_v58  ;;  %vm487_vm12 = vcmp.eq.f32.partialorder %v486_v60, 8.507059e+37 }
 0x744   :  { %v1896_v57 = vpop.eup %1895 }
 0x745   :  { %v478_v36 = vmul.f32 %v1896_v57, %v476_v56  ;;  %vm483_vm3 = vweird.f32 %v1896_v57 }
 0x746   :  { %vm484_vm11 = vmor %vm482_vm10, %vm483_vm3 }
 0x747   :  { %v479_v25 = vsub.f32 1.0, %v478_v36 }
 0x749   :  { %v480_v59 = vmul.f32 %v1896_v57, %v479_v25 }
 0x74b   :  { %v481_v61 = vadd.f32 %v1896_v57, %v480_v59 }
 0x74d   :  { %v485_v62 = vsel %vm484_vm11, %v1896_v57, %v481_v61 }
 0x74e   :  { %v490_v63 = vsel %vm487_vm12, %v489_v14, %v485_v62 }
 0x74f   :  { %1782 = vst.msk [vmem:[%s2762_s10 + $0x4] sm:$0xf] %vm282_vm9, %v490_v63 }
 0x75e   :  { %v561_v3 = vpop.permute.xlu2 %560 }
 0x75f   :  { %1786 = vmatmul.msk.f32.vlgmr.msra.gmra.mxu3 %vm59_vm4, %v561_v3 }
 0x760   :  { %1798 = vmatpush.msk.msra.mxu3 %vm159_vm7, %v2204_v45 }
 0x772   :  { %v2360_v15 = vpop.permute.xlu0 %657 }
 0x7e2   :  { %v581_v6 = vpop.f32.mrf.mxu3 }
 0x7e3   :  { %v582_v7 = vadd.f32 %v2211_v46, %v581_v6 }
 0x7e5   :  { %v584_v12 = vmax.f32 %v582_v7, 0.0 }
 0x7e7   :  { %1788 = vmatmul.msk.f32.vlgmr.msra.gmra.mxu1 %vm155_vm8, %v584_v12 }
 0x7e8   :  { %853 = vmatpush.msra.mxu1 %v2111_v29 }
 0x7ea   :  { %854 = vmatpush.msra.mxu1 %v2124_v31 }
 0x7ec   :  { %855 = vmatpush.msra.mxu1 %v2132_v32 }
 0x7ee   :  { %856 = vmatpush.msra.mxu1 %v2140_v33 }
 0x7ef   :  { %1795 = vmatmul.msk.f32.vlgmr.msrb.gmra.mxu1 %vm59_vm4, %v2360_v15 }
 0x7f0   :  { %857 = vmatpush.msra.mxu1 %v2147_v34 }
 0x7f2   :  { %858 = vmatpush.msra.mxu1 %v2162_v38 }
 0x7f4   :  { %859 = vmatpush.msra.mxu1 %v2167_v39 }
 0x7f6   :  { %860 = vmatpush.msra.mxu1 %v2174_v40 }
 0x7f8   :  { %861 = vmatpush.msra.mxu1 %v2181_v41 }
 0x7fa   :  { %1210 = vmatpush.msrb.mxu1 %v2100_v27 }
 0x7fc   :  { %1211 = vmatpush.msrb.mxu1 %v2105_v28 }
 0x7fe   :  { %1212 = vmatpush.msrb.mxu1 %v2117_v30 }
 0x864   :  { %v605_v16 = vpop.f32.mrf.mxu1 }
 0x865   :  { %v606_v60 = vadd.f32 %v2246_v11, %v605_v16 }
 0x86c   :  { %v726_v5 = vpop.f32.mrf.mxu1 }
 0x86d   :  { %v729_v18 = vadd.f32 %v1794_v17, %v726_v5 }
 0x86f   :  { %1897 = vtanh.f32 %v729_v18  ;;  %v1796_v20 = vmul.f32 -1.442695, %v729_v18 }
 0x871   :  { %1899 = vpow2.f32 %v1796_v20 }
 0x875   :  { %v1898_v51 = vpop.eup %1897 }
 0x876   :  { %752 = vrot.lane.b32.xlu1 %v1898_v51, %s2009_s21 }
 0x877   :  { %v1900_v22 = vpop.eup %1899 }
 0x878   :  { %v733_v23 = vadd.f32 1.0, %v1900_v22 }
 0x87a   :  { %1901 = vrcp.f32 %v733_v23  ;;  %v745_v43 = vand.u32 2147483648, %v733_v23  ;;  %vm739_vm14 = vweird.f32 %v733_v23  ;;  %v743_v48 = vand.u32 2147483647, %v733_v23 }
 0x87c   :  { %v746_v50 = vor.u32 1.1754944e-38, %v745_v43  ;;  %vm744_vm0 = vcmp.eq.f32.partialorder %v743_v48, 8.507059e+37 }
 0x87e   :  { %627 = vrot.lane.b32.xlu1 %v2283_v13, %s2010_s22 }
 0x880   :  { %v1902_v24 = vpop.eup %1901 }
 0x881   :  { %v735_v26 = vmul.f32 %v1902_v24, %v733_v23  ;;  %vm740_vm13 = vweird.f32 %v1902_v24 }
 0x882   :  { %vm741_vm15 = vmor %vm739_vm14, %vm740_vm13 }
 0x883   :  { %v736_v35 = vsub.f32 1.0, %v735_v26 }
 0x885   :  { %v737_v37 = vmul.f32 %v1902_v24, %v736_v35  ;;  %v767_v35 = vadd.f32 %v2340_v47, %v2283_v13 }
 0x887   :  { %v738_v42 = vadd.f32 %v1902_v24, %v737_v37 }
 0x889   :  { %v742_v49 = vsel %vm741_vm15, %v1902_v24, %v738_v42 }
 0x88a   :  { %v747_v54 = vsel %vm744_vm0, %v746_v50, %v742_v49 }
 0x88b   :  { %v750_v25 = vmul.f32 %v747_v54, %v2330_v4 }
 0x8e8   :  { %v753_v52 = vpop.permute.xlu1 %752 }
 0x8e9   :  { %v755_v55 = vmul.f32 %v753_v52, %v747_v54 }
 0x8eb   :  { %757 = vrot.lane.b32.xlu2 %v755_v55, %s2010_s22 }
 0x8f0   :  { %v628_v56 = vpop.permute.xlu1 %627 }
 0x8f1   :  { %v630_v57 = vsel %vm59_vm4, %v2194_v44, %v628_v56  ;;  %v1789_v44 = vmul.f32 -1.442695, %v606_v60 }
 0x8f2   :  { %v631_v36 = vsel %vm202_vm5, %v630_v57, %v2340_v47 }
 0x8f3   :  { %1790 = vmatmul.msk.f32.vlgmr.msra.gmra.mxu2 %vm207_vm6, %v631_v36 }
 0x8f4   :  { %1099 = vmatpush.msra.mxu2 %v2226_v8 }
 0x8f6   :  { %1100 = vmatpush.msra.mxu2 %v2231_v9 }
 0x8f8   :  { %1101 = vmatpush.msra.mxu2 %v2238_v10 }
 0x945   :  { %v758_v58 = vpop.permute.xlu2 %757 }
 0x946   :  { %v2389_v59 = vadd.f32 %v758_v58, %v750_v25 }
 0x948   :  { %1903 = vtanh.f32 %v2389_v59 }
 0x949   :  { %1905 = vpow2.f32 %v1789_v44 }
 0x94e   :  { %v1904_v61 = vpop.eup %1903 }
 0x94f   :  { %763 = vrot.lane.b32.xlu0 %v1904_v61, %s2011_s23  ;;  %v1906_v14 = vpop.eup %1905 }
 0x950   :  { %v611_v62 = vadd.f32 1.0, %v1906_v14 }
 0x952   :  { %1907 = vrcp.f32 %v611_v62  ;;  %v623_v12 = vand.u32 2147483648, %v611_v62  ;;  %vm617_vm2 = vweird.f32 %v611_v62  ;;  %v621_v17 = vand.u32 2147483647, %v611_v62 }
 0x954   :  { %v624_v5 = vor.u32 1.1754944e-38, %v623_v12  ;;  %vm622_vm10 = vcmp.eq.f32.partialorder %v621_v17, 8.507059e+37 }
 0x958   :  { %v1908_v63 = vpop.eup %1907 }
 0x959   :  { %v613_v3 = vmul.f32 %v1908_v63, %v611_v62  ;;  %vm618_vm1 = vweird.f32 %v1908_v63 }
 0x95a   :  { %vm619_vm3 = vmor %vm617_vm2, %vm618_vm1 }
 0x95b   :  { %v614_v6 = vsub.f32 1.0, %v613_v3 }
 0x95d   :  { %v615_v7 = vmul.f32 %v1908_v63, %v614_v6 }
 0x95f   :  { %v616_v4 = vadd.f32 %v1908_v63, %v615_v7 }
 0x961   :  { %v620_v16 = vsel %vm619_vm3, %v1908_v63, %v616_v4 }
 0x962   :  { %v625_v20 = vsel %vm622_vm10, %v624_v5, %v620_v16 }
 0x976   :  { %v652_v18 = vpop.f32.mrf.mxu2 }
 0x977   :  { %v653_v51 = vadd.f32 %v2258_v21, %v652_v18 }
 0x979   :  { %v655_v22 = vmul.f32 %v653_v51, %v625_v20 }
 0x97b   :  { %v660_v23 = vadd.f32 %v2360_v15, %v655_v22 }
 0x97d   :  { %1791 = vmatmul.msk.f32.vlgmr.msrb.gmra.mxu3 %vm59_vm4, %v660_v23 }
 0x97e   :  { %933 = vmatpush.msrb.mxu3 %v2070_v0 }
 0x980   :  { %934 = vmatpush.msrb.mxu3 %v2075_v1 }
 0x982   :  { %935 = vmatpush.msrb.mxu3 %v2081_v2 }
 0x9c1   :  { %v764_v24 = vpop.permute.xlu0 %763 }
 0x9c2   :  { %v2400_v26 = vmul.f32 %v764_v24, %v747_v54 }
 0x9c4   :  { %868 = vrot.lane.b32.xlu0 %v2400_v26, %s2009_s21  ;;  %v768_v37 = vadd.f32 %v767_v35, %v2400_v26 }
 0x9c6   :  { %v769_v42 = vmul.f32 0.33333334, %v768_v37 }
 0x9c8   :  { %771 = vrot.lane.b32.xlu2 %v769_v42, %s2009_s21 }
 0xa00   :  { %v681_v43 = vpop.f32.mrf.mxu3 }
 0xa01   :  { %v682_v0 = vadd.f32 %v2275_v53, %v681_v43 }
 0xa03   :  { %v1792_v1 = vmul.f32 -1.442695, %v682_v0 }
 0xa05   :  { %1909 = vpow2.f32 %v1792_v1 }
 0xa0b   :  { %v1910_v2 = vpop.eup %1909 }
 0xa0c   :  { %v687_v48 = vadd.f32 1.0, %v1910_v2 }
 0xa0e   :  { %1911 = vrcp.f32 %v687_v48  ;;  %v699_v13 = vand.u32 2147483648, %v687_v48  ;;  %v697_v55 = vand.u32 2147483647, %v687_v48  ;;  %vm693_vm12 = vweird.f32 %v687_v48 }
 0xa10   :  { %v700_v57 = vor.u32 1.1754944e-38, %v699_v13  ;;  %vm698_vm14 = vcmp.eq.f32.partialorder %v697_v55, 8.507059e+37 }
 0xa14   :  { %v1912_v49 = vpop.eup %1911 }
 0xa15   :  { %v689_v50 = vmul.f32 %v1912_v49, %v687_v48  ;;  %vm694_vm11 = vweird.f32 %v1912_v49 }
 0xa16   :  { %vm695_vm13 = vmor %vm693_vm12, %vm694_vm11 }
 0xa17   :  { %v690_v52 = vsub.f32 1.0, %v689_v50 }
 0xa19   :  { %v691_v54 = vmul.f32 %v1912_v49, %v690_v52 }
 0xa1b   :  { %v692_v56 = vadd.f32 %v1912_v49, %v691_v54 }
 0xa1d   :  { %v696_v36 = vsel %vm695_vm13, %v1912_v49, %v692_v56 }
 0xa1e   :  { %v701_v25 = vsel %vm698_vm14, %v700_v57, %v696_v36  ;;  %v2461_v57 = vld [vmem:[%s2752_s1 + $0x10] sm:$0xff]  ;;  %v2467_v36 = vld [vmem:[%s2752_s1 + $0x8] sm:$0xff] }
 0xa1f   :  { %1793 = vst.msk [vmem:[%s2762_s10 + $0x8] sm:$0xf] %vm282_vm9, %v701_v25  ;;  %v2473_v25 = vld [vmem:[%s2752_s1] sm:$0xff] }
 0xa22   :  { %v772_v58 = vpop.permute.xlu2 %771 }
 0xa23   :  { %1797 = vmatmul.msk.f32.vlgmr.msrb.gmra.mxu0 %vm59_vm4, %v772_v58 }
 0xa24   :  { %1809 = vmatpush.msk.msrb.mxu0 %vm159_vm7, %v2204_v45 }
 0xa36   :  { %v2421_v14 = vpop.permute.xlu0 %868 }
 0xaa0   :  { %v792_v60 = vpop.f32.mrf.mxu0 }
 0xaa1   :  { %v793_v44 = vadd.f32 %v2211_v46, %v792_v60 }
 0xaa3   :  { %v795_v61 = vmax.f32 %v793_v44, 0.0  ;;  %v978_v44 = vadd.f32 %v2400_v26, %v2340_v47 }
 0xaa5   :  { %1799 = vmatmul.msk.f32.vlgmr.msra.gmra.mxu3 %vm155_vm8, %v795_v61 }
 0xaa6   :  { %1064 = vmatpush.msra.mxu3 %v2111_v29 }
 0xaa8   :  { %1065 = vmatpush.msra.mxu3 %v2124_v31  ;;  %v1805_v31 = vld [vmem:[%s2753_s0 + $0x10] sm:$0xf] }
 0xaaa   :  { %1066 = vmatpush.msra.mxu3 %v2132_v32 }
 0xaac   :  { %1067 = vmatpush.msra.mxu3 %v2140_v33 }
 0xaad   :  { %1806 = vmatmul.msk.f32.vlgmr.msrb.gmra.mxu3 %vm59_vm4, %v2421_v14 }
 0xaae   :  { %1068 = vmatpush.msra.mxu3 %v2147_v34 }
 0xab0   :  { %1069 = vmatpush.msra.mxu3 %v2162_v38 }
 0xab2   :  { %1070 = vmatpush.msra.mxu3 %v2167_v39 }
 0xab4   :  { %1071 = vmatpush.msra.mxu3 %v2174_v40 }
 0xab6   :  { %1072 = vmatpush.msra.mxu3 %v2181_v41 }
 0xab8   :  { %1421 = vmatpush.msrb.mxu3 %v2100_v27 }
 0xaba   :  { %1422 = vmatpush.msrb.mxu3 %v2105_v28 }
 0xabc   :  { %1423 = vmatpush.msrb.mxu3 %v2117_v30 }
 0xb28   :  { %v816_v29 = vpop.f32.mrf.mxu3 }
 0xb29   :  { %v817_v51 = vadd.f32 %v2246_v11, %v816_v29 }
 0xb2b   :  { %v1800_v22 = vmul.f32 -1.442695, %v817_v51  ;;  %v2531_v51 = vld [vmem:[%s2755_s6 + $0x18] sm:$0xff] }
 0xb30   :  { %v937_v32 = vpop.f32.mrf.mxu3 }
 0xb31   :  { %v940_v33 = vadd.f32 %v1805_v31, %v937_v32 }
 0xb33   :  { %1913 = vtanh.f32 %v940_v33  ;;  %v1807_v38 = vmul.f32 -1.442695, %v940_v33 }
 0xb35   :  { %1915 = vpow2.f32 %v1807_v38 }
 0xb39   :  { %v1914_v34 = vpop.eup %1913 }
 0xb3a   :  { %963 = vrot.lane.b32.xlu1 %v1914_v34, %s2009_s21 }
 0xb3b   :  { %v1916_v27 = vpop.eup %1915 }
 0xb3c   :  { %v944_v28 = vadd.f32 1.0, %v1916_v27 }
 0xb3e   :  { %1917 = vrcp.f32 %v944_v28  ;;  %v956_v63 = vand.u32 2147483648, %v944_v28  ;;  %vm950_vm0 = vweird.f32 %v944_v28  ;;  %v954_v3 = vand.u32 2147483647, %v944_v28 }
 0xb40   :  { %v957_v7 = vor.u32 1.1754944e-38, %v956_v63  ;;  %vm955_vm2 = vcmp.eq.f32.partialorder %v954_v3, 8.507059e+37 }
 0xb42   :  { %838 = vrot.lane.b32.xlu1 %v2340_v47, %s2010_s22 }
 0xb44   :  { %v1918_v30 = vpop.eup %1917 }
 0xb45   :  { %v946_v39 = vmul.f32 %v1918_v30, %v944_v28  ;;  %vm951_vm15 = vweird.f32 %v1918_v30 }
 0xb46   :  { %vm952_vm1 = vmor %vm950_vm0, %vm951_vm15 }
 0xb47   :  { %v947_v40 = vsub.f32 1.0, %v946_v39 }
 0xb49   :  { %v948_v41 = vmul.f32 %v1918_v30, %v947_v40 }
 0xb4b   :  { %v949_v62 = vadd.f32 %v1918_v30, %v948_v41 }
 0xb4d   :  { %v953_v6 = vsel %vm952_vm1, %v1918_v30, %v949_v62 }
 0xb4e   :  { %v958_v12 = vsel %vm955_vm2, %v957_v7, %v953_v6 }
 0xb4f   :  { %v961_v20 = vmul.f32 %v958_v12, %v2389_v59 }
 0xbac   :  { %v964_v4 = vpop.permute.xlu1 %963 }
 0xbad   :  { %v966_v17 = vmul.f32 %v964_v4, %v958_v12 }
 0xbaf   :  { %968 = vrot.lane.b32.xlu2 %v966_v17, %s2010_s22  ;;  %v2497_v17 = vld [vmem:[%s2755_s6 + $0x40] sm:$0xff] }
 0xbb4   :  { %v839_v16 = vpop.permute.xlu1 %838 }
 0xbb5   :  { %v841_v5 = vsel %vm59_vm4, %v2301_v19, %v839_v16  ;;  %v2503_v16 = vld [vmem:[%s2755_s6 + $0x38] sm:$0xff] }
 0xbb6   :  { %v842_v18 = vsel %vm202_vm5, %v841_v5, %v2400_v26  ;;  %v2517_v5 = vld [vmem:[%s2755_s6 + $0x28] sm:$0xff] }
 0xbb7   :  { %1801 = vmatmul.msk.f32.vlgmr.msra.gmra.mxu1 %vm207_vm6, %v842_v18  ;;  %v2525_v18 = vld [vmem:[%s2755_s6 + $0x20] sm:$0xff] }
 0xbb8   :  { %1310 = vmatpush.msra.mxu1 %v2226_v8 }
 0xbba   :  { %1311 = vmatpush.msra.mxu1 %v2231_v9 }
 0xbbc   :  { %1312 = vmatpush.msra.mxu1 %v2238_v10 }
 0xc09   :  { %v969_v23 = vpop.permute.xlu2 %968 }
 0xc0a   :  { %v2451_v24 = vadd.f32 %v969_v23, %v961_v20  ;;  %v2537_v20 = vld [vmem:[%s2755_s6 + $0x10] sm:$0xff]  ;;  %v2549_v23 = vld [vmem:[%s2755_s6] sm:$0xff] }
 0xc0c   :  { %1919 = vtanh.f32 %v2451_v24 }
 0xc0d   :  { %1921 = vpow2.f32 %v1800_v22  ;;  %v2543_v22 = vld [vmem:[%s2755_s6 + $0x8] sm:$0xff] }
 0xc12   :  { %v1920_v19 = vpop.eup %1919 }
 0xc13   :  { %v1922_v35 = vpop.eup %1921  ;;  %974 = vrot.lane.b32.xlu0 %v1920_v19, %s2011_s23  ;;  %v1997_v19 = vld [vmem:[%s2754_s2 + $0x10] sm:$0xff] }
 0xc14   :  { %v822_v37 = vadd.f32 1.0, %v1922_v35  ;;  %v1998_v35 = vld [vmem:[%s2754_s2 + $0x8] sm:$0xff] }
 0xc16   :  { %1923 = vrcp.f32 %v822_v37  ;;  %v834_v59 = vand.u32 2147483648, %v822_v37  ;;  %vm828_vm10 = vweird.f32 %v822_v37  ;;  %v832_v48 = vand.u32 2147483647, %v822_v37 }
 0xc18   :  { %v835_v50 = vor.u32 1.1754944e-38, %v834_v59  ;;  %vm833_vm12 = vcmp.eq.f32.partialorder %v832_v48, 8.507059e+37 }
 0xc1c   :  { %v1924_v42 = vpop.eup %1923 }
 0xc1d   :  { %v824_v43 = vmul.f32 %v1924_v42, %v822_v37  ;;  %vm829_vm3 = vweird.f32 %v1924_v42  ;;  %v1999_v37 = vld [vmem:[%s2754_s2] sm:$0xff] }
 0xc1e   :  { %vm830_vm11 = vmor %vm828_vm10, %vm829_vm3 }
 0xc1f   :  { %v825_v0 = vsub.f32 1.0, %v824_v43  ;;  %v1816_v43 = vld [vmem:[%s2753_s0 + $0x14] sm:$0xf] }
 0xc21   :  { %v826_v1 = vmul.f32 %v1924_v42, %v825_v0 }
 0xc23   :  { %v827_v2 = vadd.f32 %v1924_v42, %v826_v1 }
 0xc25   :  { %v831_v49 = vsel %vm830_vm11, %v1924_v42, %v827_v2 }
 0xc26   :  { %v836_v54 = vsel %vm833_vm12, %v835_v50, %v831_v49 }
 0xc34   :  { %v863_v52 = vpop.f32.mrf.mxu1 }
 0xc35   :  { %v864_v13 = vadd.f32 %v2258_v21, %v863_v52 }
 0xc37   :  { %v866_v55 = vmul.f32 %v864_v13, %v836_v54 }
 0xc39   :  { %v871_v56 = vadd.f32 %v2421_v14, %v866_v55 }
 0xc3b   :  { %1802 = vmatmul.msk.f32.vlgmr.msra.gmra.mxu0 %vm59_vm4, %v871_v56 }
 0xc3c   :  { %1144 = vmatpush.msra.mxu0 %v2461_v57 }
 0xc3e   :  { %1145 = vmatpush.msra.mxu0 %v2467_v36 }
 0xc40   :  { %1146 = vmatpush.msra.mxu0 %v2473_v25 }
 0xc85   :  { %v975_v58 = vpop.permute.xlu0 %974 }
 0xc86   :  { %v2476_v60 = vmul.f32 %v975_v58, %v958_v12 }
 0xc88   :  { %1079 = vrot.lane.b32.xlu0 %v2476_v60, %s2009_s21  ;;  %v979_v61 = vadd.f32 %v978_v44, %v2476_v60 }
 0xc8a   :  { %v980_v29 = vmul.f32 0.33333334, %v979_v61 }
 0xc8c   :  { %982 = vrot.lane.b32.xlu2 %v980_v29, %s2009_s21 }
 0xcb8   :  { %v892_v31 = vpop.f32.mrf.mxu0 }
 0xcb9   :  { %v893_v32 = vadd.f32 %v2275_v53, %v892_v31 }
 0xcbb   :  { %v1803_v33 = vmul.f32 -1.442695, %v893_v32 }
 0xcbd   :  { %1925 = vpow2.f32 %v1803_v33 }
 0xcc3   :  { %v1926_v34 = vpop.eup %1925 }
 0xcc4   :  { %v898_v38 = vadd.f32 1.0, %v1926_v34 }
 0xcc6   :  { %1927 = vrcp.f32 %v898_v38  ;;  %v910_v47 = vand.u32 2147483648, %v898_v38  ;;  %v908_v40 = vand.u32 2147483647, %v898_v38  ;;  %vm904_vm14 = vweird.f32 %v898_v38 }
 0xcc8   :  { %v911_v62 = vor.u32 1.1754944e-38, %v910_v47  ;;  %vm909_vm0 = vcmp.eq.f32.partialorder %v908_v40, 8.507059e+37 }
 0xccc   :  { %v1928_v27 = vpop.eup %1927 }
 0xccd   :  { %v900_v28 = vmul.f32 %v1928_v27, %v898_v38  ;;  %vm905_vm13 = vweird.f32 %v1928_v27 }
 0xcce   :  { %vm906_vm15 = vmor %vm904_vm14, %vm905_vm13 }
 0xccf   :  { %v901_v30 = vsub.f32 1.0, %v900_v28 }
 0xcd1   :  { %v902_v39 = vmul.f32 %v1928_v27, %v901_v30 }
 0xcd3   :  { %v903_v41 = vadd.f32 %v1928_v27, %v902_v39 }
 0xcd5   :  { %v907_v63 = vsel %vm906_vm15, %v1928_v27, %v903_v41 }
 0xcd6   :  { %v912_v3 = vsel %vm909_vm0, %v911_v62, %v907_v63 }
 0xcd7   :  { %1804 = vst.msk [vmem:[%s2762_s10 + $0xc] sm:$0xf] %vm282_vm9, %v912_v3 }
 0xce6   :  { %v983_v6 = vpop.permute.xlu2 %982 }
 0xce7   :  { %1808 = vmatmul.msk.f32.vlgmr.msrb.gmra.mxu2 %vm59_vm4, %v983_v6 }
 0xce8   :  { %1820 = vmatpush.msk.msrb.mxu2 %vm159_vm7, %v2204_v45  ;;  %v2509_v45 = vld [vmem:[%s2755_s6 + $0x30] sm:$0xff] }
 0xd6a   :  { %v1003_v7 = vpop.f32.mrf.mxu2 }
 0xd6b   :  { %v1004_v4 = vadd.f32 %v2211_v46, %v1003_v7  ;;  %v2512_v46 = vpop.permute.xlu0 %1079 }
 0xd6d   :  { %v1006_v12 = vmax.f32 %v1004_v4, 0.0 }
 0xd6f   :  { %1810 = vmatmul.msk.f32.vlgmr.msrb.gmra.mxu0 %vm155_vm8, %v1006_v12 }
 0xd70   :  { %1275 = vmatpush.msrb.mxu0 %v2497_v17 }
 0xd72   :  { %1276 = vmatpush.msrb.mxu0 %v2503_v16 }
 0xd74   :  { %1277 = vmatpush.msrb.mxu0 %v2509_v45 }
 0xd76   :  { %1278 = vmatpush.msrb.mxu0 %v2517_v5 }
 0xd77   :  { %1817 = vmatmul.msk.f32.vlgmr.msra.gmra.mxu0 %vm59_vm4, %v2512_v46 }
 0xd78   :  { %1279 = vmatpush.msrb.mxu0 %v2525_v18 }
 0xd7a   :  { %1280 = vmatpush.msrb.mxu0 %v2531_v51 }
 0xd7c   :  { %1281 = vmatpush.msrb.mxu0 %v2537_v20 }
 0xd7e   :  { %1282 = vmatpush.msrb.mxu0 %v2543_v22 }
 0xd80   :  { %1283 = vmatpush.msrb.mxu0 %v2549_v23 }
 0xd82   :  { %1632 = vmatpush.msra.mxu0 %v1997_v19 }
 0xd84   :  { %1633 = vmatpush.msra.mxu0 %v1998_v35 }
 0xd86   :  { %1634 = vmatpush.msra.mxu0 %v1999_v37 }
 0xdec   :  { %v1027_v42 = vpop.f32.mrf.mxu0 }
 0xded   :  { %v1028_v47 = vadd.f32 %v2246_v11, %v1027_v42 }
 0xdf4   :  { %v1148_v0 = vpop.f32.mrf.mxu0 }
 0xdf5   :  { %v1151_v1 = vadd.f32 %v1816_v43, %v1148_v0  ;;  %v1189_v43 = vadd.f32 %v2476_v60, %v2400_v26 }
 0xdf7   :  { %1929 = vtanh.f32 %v1151_v1  ;;  %v1818_v59 = vmul.f32 -1.442695, %v1151_v1 }
 0xdf9   :  { %1931 = vpow2.f32 %v1818_v59 }
 0xdfd   :  { %v1930_v2 = vpop.eup %1929 }
 0xdfe   :  { %1174 = vrot.lane.b32.xlu1 %v1930_v2, %s2009_s21 }
 0xdff   :  { %v1932_v48 = vpop.eup %1931 }
 0xe00   :  { %v1155_v49 = vadd.f32 1.0, %v1932_v48 }
 0xe02   :  { %1933 = vrcp.f32 %v1155_v49  ;;  %v1167_v56 = vand.u32 2147483648, %v1155_v49  ;;  %vm1161_vm2 = vweird.f32 %v1155_v49  ;;  %v1165_v58 = vand.u32 2147483647, %v1155_v49 }
 0xe04   :  { %v1168_v61 = vor.u32 1.1754944e-38, %v1167_v56  ;;  %vm1166_vm10 = vcmp.eq.f32.partialorder %v1165_v58, 8.507059e+37 }
 0xe06   :  { %1049 = vrot.lane.b32.xlu1 %v2400_v26, %s2010_s22 }
 0xe08   :  { %v1934_v50 = vpop.eup %1933 }
 0xe09   :  { %v1157_v52 = vmul.f32 %v1934_v50, %v1155_v49  ;;  %vm1162_vm1 = vweird.f32 %v1934_v50 }
 0xe0a   :  { %vm1163_vm3 = vmor %vm1161_vm2, %vm1162_vm1 }
 0xe0b   :  { %v1158_v13 = vsub.f32 1.0, %v1157_v52 }
 0xe0d   :  { %v1159_v54 = vmul.f32 %v1934_v50, %v1158_v13 }
 0xe0f   :  { %v1160_v55 = vadd.f32 %v1934_v50, %v1159_v54 }
 0xe11   :  { %v1164_v44 = vsel %vm1163_vm3, %v1934_v50, %v1160_v55 }
 0xe12   :  { %v1169_v31 = vsel %vm1166_vm10, %v1168_v61, %v1164_v44 }
 0xe13   :  { %v1172_v27 = vmul.f32 %v1169_v31, %v2451_v24 }
 0xe70   :  { %v1175_v29 = vpop.permute.xlu1 %1174 }
 0xe71   :  { %v1177_v32 = vmul.f32 %v1175_v29, %v1169_v31  ;;  %v2605_v29 = vld [vmem:[%s2758_s4] sm:$0xf] }
 0xe73   :  { %1179 = vrot.lane.b32.xlu2 %v1177_v32, %s2010_s22  ;;  %v2612_v32 = vld [vmem:[%s2756_s3] ss:$0 sm:$0xff] }
 0xe78   :  { %v1050_v33 = vpop.permute.xlu1 %1049 }
 0xe79   :  { %v1052_v34 = vsel %vm59_vm4, %v2360_v15, %v1050_v33  ;;  %v1811_v15 = vmul.f32 -1.442695, %v1028_v47 }
 0xe7a   :  { %v1053_v38 = vsel %vm202_vm5, %v1052_v34, %v2476_v60 }
 0xe7b   :  { %1812 = vmatmul.msk.f32.vlgmr.msra.gmra.mxu3 %vm207_vm6, %v1053_v38 }
 0xe7c   :  { %1521 = vmatpush.msra.mxu3 %v2226_v8 }
 0xe7e   :  { %1522 = vmatpush.msra.mxu3 %v2231_v9 }
 0xe80   :  { %1523 = vmatpush.msra.mxu3 %v2238_v10 }
 0xecd   :  { %v1180_v28 = vpop.permute.xlu2 %1179 }
 0xece   :  { %v2577_v30 = vadd.f32 %v1180_v28, %v1172_v27  ;;  %v1827_v28 = vld [vmem:[%s2753_s0 + $0x18] sm:$0xf] }
 0xed0   :  { %1935 = vtanh.f32 %v2577_v30 }
 0xed1   :  { %1937 = vpow2.f32 %v1811_v15 }
 0xed6   :  { %v1936_v39 = vpop.eup %1935 }
 0xed7   :  { %1185 = vrot.lane.b32.xlu0 %v1936_v39, %s2011_s23  ;;  %v1938_v40 = vpop.eup %1937 }
 0xed8   :  { %v1033_v8 = vadd.f32 1.0, %v1938_v40 }
 0xeda   :  { %1939 = vrcp.f32 %v1033_v8  ;;  %v1045_v63 = vand.u32 2147483648, %v1033_v8  ;;  %vm1039_vm12 = vweird.f32 %v1033_v8  ;;  %v1043_v3 = vand.u32 2147483647, %v1033_v8 }
 0xedc   :  { %v1046_v6 = vor.u32 1.1754944e-38, %v1045_v63  ;;  %vm1044_vm14 = vcmp.eq.f32.partialorder %v1043_v3, 8.507059e+37 }
 0xee0   :  { %v1940_v9 = vpop.eup %1939 }
 0xee1   :  { %v1035_v41 = vmul.f32 %v1940_v9, %v1033_v8  ;;  %vm1040_vm11 = vweird.f32 %v1940_v9 }
 0xee2   :  { %vm1041_vm13 = vmor %vm1039_vm12, %vm1040_vm11 }
 0xee3   :  { %v1036_v10 = vsub.f32 1.0, %v1035_v41 }
 0xee5   :  { %v1037_v62 = vmul.f32 %v1940_v9, %v1036_v10 }
 0xee7   :  { %v1038_v24 = vadd.f32 %v1940_v9, %v1037_v62 }
 0xee9   :  { %v1042_v11 = vsel %vm1041_vm13, %v1940_v9, %v1038_v24 }
 0xeea   :  { %v1047_v12 = vsel %vm1044_vm14, %v1046_v6, %v1042_v11 }
 0xefe   :  { %v1074_v7 = vpop.f32.mrf.mxu3 }
 0xeff   :  { %v1075_v4 = vadd.f32 %v2258_v21, %v1074_v7 }
 0xf01   :  { %v1077_v19 = vmul.f32 %v1075_v4, %v1047_v12 }
 0xf03   :  { %v1082_v35 = vadd.f32 %v2512_v46, %v1077_v19 }
 0xf05   :  { %1813 = vmatmul.msk.f32.vlgmr.msra.gmra.mxu2 %vm59_vm4, %v1082_v35 }
 0xf06   :  { %1355 = vmatpush.msra.mxu2 %v2461_v57 }
 0xf08   :  { %1356 = vmatpush.msra.mxu2 %v2467_v36 }
 0xf0a   :  { %1357 = vmatpush.msra.mxu2 %v2473_v25 }
 0xf49   :  { %v1186_v37 = vpop.permute.xlu0 %1185 }
 0xf4a   :  { %v2588_v42 = vmul.f32 %v1186_v37, %v1169_v31 }
 0xf4c   :  { %1290 = vrot.lane.b32.xlu0 %v2588_v42, %s2009_s21  ;;  %v1190_v21 = vadd.f32 %v1189_v43, %v2588_v42 }
 0xf4e   :  { %v1191_v0 = vmul.f32 0.33333334, %v1190_v21  ;;  %v2002_v21 = vld [vmem:[%s2761_s8 + $0x10] sm:$0xff] }
 0xf50   :  { %1193 = vrot.lane.b32.xlu2 %v1191_v0, %s2009_s21  ;;  %v2003_v0 = vld [vmem:[%s2761_s8 + $0x8] sm:$0xff] }
 0xf88   :  { %v1103_v1 = vpop.f32.mrf.mxu2 }
 0xf89   :  { %v1104_v2 = vadd.f32 %v2275_v53, %v1103_v1  ;;  %v2004_v1 = vld [vmem:[%s2761_s8] sm:$0xff] }
 0xf8b   :  { %v1814_v59 = vmul.f32 -1.442695, %v1104_v2 }
 0xf8d   :  { %1941 = vpow2.f32 %v1814_v59 }
 0xf93   :  { %v1942_v48 = vpop.eup %1941 }
 0xf94   :  { %v1109_v49 = vadd.f32 1.0, %v1942_v48 }
 0xf96   :  { %1943 = vrcp.f32 %v1109_v49  ;;  %v1121_v26 = vand.u32 2147483648, %v1109_v49  ;;  %v1119_v55 = vand.u32 2147483647, %v1109_v49  ;;  %vm1115_vm0 = vweird.f32 %v1109_v49 }
 0xf98   :  { %v1122_v58 = vor.u32 1.1754944e-38, %v1121_v26  ;;  %vm1120_vm2 = vcmp.eq.f32.partialorder %v1119_v55, 8.507059e+37 }
 0xf9c   :  { %v1944_v50 = vpop.eup %1943 }
 0xf9d   :  { %v1111_v52 = vmul.f32 %v1944_v50, %v1109_v49  ;;  %vm1116_vm15 = vweird.f32 %v1944_v50 }
 0xf9e   :  { %vm1117_vm1 = vmor %vm1115_vm0, %vm1116_vm15 }
 0xf9f   :  { %v1112_v13 = vsub.f32 1.0, %v1111_v52 }
 0xfa1   :  { %v1113_v54 = vmul.f32 %v1944_v50, %v1112_v13 }
 0xfa3   :  { %v1114_v56 = vadd.f32 %v1944_v50, %v1113_v54 }
 0xfa5   :  { %v1118_v44 = vsel %vm1117_vm1, %v1944_v50, %v1114_v56 }
 0xfa6   :  { %v1123_v61 = vsel %vm1120_vm2, %v1122_v58, %v1118_v44 }
 0xfa7   :  { %1815 = vst.msk [vmem:[%s2762_s10 + $0x10] sm:$0xf] %vm282_vm9, %v1123_v61 }
 0xfaa   :  { %v1194_v53 = vpop.permute.xlu2 %1193 }
 0xfab   :  { %1819 = vmatmul.msk.f32.vlgmr.msrb.gmra.mxu1 %vm59_vm4, %v1194_v53 }
 0xfac   :  { %1831 = vmatpush.msk.msrb.mxu1 %vm159_vm7, %v2605_v29 }
 0xfbe   :  { %v2619_v38 = vpop.permute.xlu0 %1290 }
0x1028   :  { %v1214_v31 = vpop.f32.mrf.mxu1 }
0x1029   :  { %v1215_v33 = vadd.f32 %v2612_v32, %v1214_v31 }
0x102b   :  { %v1217_v34 = vmax.f32 %v1215_v33, 0.0 }
0x102d   :  { %1821 = vmatmul.msk.f32.vlgmr.msrb.gmra.mxu2 %vm155_vm8, %v1217_v34  ;;  %v2664_v34 = vld [vmem:[%s2757_s7] ss:$0 sm:$0xff] }
0x102e   :  { %1486 = vmatpush.msrb.mxu2 %v2497_v17 }
0x1030   :  { %1487 = vmatpush.msrb.mxu2 %v2503_v16 }
0x1032   :  { %1488 = vmatpush.msrb.mxu2 %v2509_v45 }
0x1034   :  { %1489 = vmatpush.msrb.mxu2 %v2517_v5 }
0x1035   :  { %1828 = vmatmul.msk.f32.vlgmr.msra.gmra.mxu2 %vm59_vm4, %v2619_v38 }
0x1036   :  { %1490 = vmatpush.msrb.mxu2 %v2525_v18 }
0x1038   :  { %1491 = vmatpush.msrb.mxu2 %v2531_v51 }
0x103a   :  { %1492 = vmatpush.msrb.mxu2 %v2537_v20 }
0x103c   :  { %1493 = vmatpush.msrb.mxu2 %v2543_v22 }
0x103e   :  { %1494 = vmatpush.msrb.mxu2 %v2549_v23 }
0x10b0   :  { %v1238_v27 = vpop.f32.mrf.mxu2 }
0x10b8   :  { %v1359_v47 = vpop.f32.mrf.mxu2 }
0x10b9   :  { %v1362_v15 = vadd.f32 %v1827_v28, %v1359_v47 }
0x10bb   :  { %1945 = vtanh.f32 %v1362_v15  ;;  %v1829_v40 = vmul.f32 -1.442695, %v1362_v15 }
0x10bd   :  { %1947 = vpow2.f32 %v1829_v40 }
0x10c1   :  { %v1946_v39 = vpop.eup %1945 }
0x10c2   :  { %1385 = vrot.lane.b32.xlu1 %v1946_v39, %s2009_s21 }
0x10c3   :  { %v1948_v8 = vpop.eup %1947 }
0x10c4   :  { %v1366_v9 = vadd.f32 1.0, %v1948_v8  ;;  %v1400_v8 = vadd.f32 %v2588_v42, %v2476_v60 }
0x10c6   :  { %1949 = vrcp.f32 %v1366_v9  ;;  %v1378_v3 = vand.u32 2147483648, %v1366_v9  ;;  %vm1372_vm10 = vweird.f32 %v1366_v9  ;;  %v1376_v11 = vand.u32 2147483647, %v1366_v9 }
0x10c8   :  { %v1379_v7 = vor.u32 1.1754944e-38, %v1378_v3  ;;  %vm1377_vm12 = vcmp.eq.f32.partialorder %v1376_v11, 8.507059e+37 }
0x10ca   :  { %1260 = vrot.lane.b32.xlu1 %v2476_v60, %s2010_s22 }
0x10cc   :  { %v1950_v41 = vpop.eup %1949 }
0x10cd   :  { %v1368_v10 = vmul.f32 %v1950_v41, %v1366_v9  ;;  %vm1373_vm3 = vweird.f32 %v1950_v41 }
0x10ce   :  { %vm1374_vm11 = vmor %vm1372_vm10, %vm1373_vm3 }
0x10cf   :  { %v1369_v62 = vsub.f32 1.0, %v1368_v10 }
0x10d1   :  { %v1370_v24 = vmul.f32 %v1950_v41, %v1369_v62 }
0x10d3   :  { %v1371_v63 = vadd.f32 %v1950_v41, %v1370_v24 }
0x10d5   :  { %v1375_v6 = vsel %vm1374_vm11, %v1950_v41, %v1371_v63 }
0x10d6   :  { %v1380_v12 = vsel %vm1377_vm12, %v1379_v7, %v1375_v6 }
0x10d7   :  { %v1383_v59 = vmul.f32 %v1380_v12, %v2577_v30 }
0x1134   :  { %v1386_v4 = vpop.permute.xlu1 %1385 }
0x1135   :  { %v1388_v19 = vmul.f32 %v1386_v4, %v1380_v12 }
0x1137   :  { %1390 = vrot.lane.b32.xlu2 %v1388_v19, %s2010_s22 }
0x113c   :  { %v1261_v35 = vpop.permute.xlu1 %1260 }
0x113d   :  { %v1263_v37 = vsel %vm59_vm4, %v2421_v14, %v1261_v35  ;;  %v2653_v14 = vld [vmem:[%s2759_s5] ss:$0 sm:$0xff] }
0x113e   :  { %v1264_v43 = vsel %vm202_vm5, %v1263_v37, %v2588_v42  ;;  %v1239_v2 = vadd.f32 %v2653_v14, %v1238_v27 }
0x113f   :  { %1823 = vmatmul.msk.f32.vlgmr.msrb.gmra.mxu0 %vm207_vm6, %v1264_v43 }
0x1140   :  { %1732 = vmatpush.msrb.mxu0 %v2002_v21  ;;  %v1822_v48 = vmul.f32 -1.442695, %v1239_v2 }
0x1142   :  { %1733 = vmatpush.msrb.mxu0 %v2003_v0 }
0x1144   :  { %1734 = vmatpush.msrb.mxu0 %v2004_v1 }
0x1191   :  { %v1391_v49 = vpop.permute.xlu2 %1390 }
0x1192   :  { %v2657_v50 = vadd.f32 %v1391_v49, %v1383_v59 }
0x1194   :  { %1951 = vtanh.f32 %v2657_v50 }
0x1195   :  { %1953 = vpow2.f32 %v1822_v48 }
0x119a   :  { %v1952_v52 = vpop.eup %1951 }
0x119b   :  { %v1954_v13 = vpop.eup %1953  ;;  %1396 = vrot.lane.b32.xlu0 %v1952_v52, %s2011_s23 }
0x119c   :  { %v1244_v26 = vadd.f32 1.0, %v1954_v13 }
0x119e   :  { %1955 = vrcp.f32 %v1244_v26  ;;  %v1256_v30 = vand.u32 2147483648, %v1244_v26  ;;  %vm1250_vm14 = vweird.f32 %v1244_v26  ;;  %v1254_v61 = vand.u32 2147483647, %v1244_v26 }
0x11a0   :  { %v1257_v31 = vor.u32 1.1754944e-38, %v1256_v30  ;;  %vm1255_vm0 = vcmp.eq.f32.partialorder %v1254_v61, 8.507059e+37 }
0x11a4   :  { %v1956_v54 = vpop.eup %1955 }
0x11a5   :  { %v1246_v55 = vmul.f32 %v1956_v54, %v1244_v26  ;;  %vm1251_vm13 = vweird.f32 %v1956_v54 }
0x11a6   :  { %vm1252_vm15 = vmor %vm1250_vm14, %vm1251_vm13 }
0x11a7   :  { %v1247_v56 = vsub.f32 1.0, %v1246_v55 }
0x11a9   :  { %v1248_v58 = vmul.f32 %v1956_v54, %v1247_v56 }
0x11ab   :  { %v1249_v44 = vadd.f32 %v1956_v54, %v1248_v58 }
0x11ad   :  { %v1253_v53 = vsel %vm1252_vm15, %v1956_v54, %v1249_v44 }
0x11ae   :  { %v1258_v28 = vsel %vm1255_vm0, %v1257_v31, %v1253_v53 }
0x11bc   :  { %v1285_v33 = vpop.f32.mrf.mxu0 }
0x11bd   :  { %v1286_v27 = vadd.f32 %v2664_v34, %v1285_v33 }
0x11bf   :  { %v1288_v47 = vmul.f32 %v1286_v27, %v1258_v28 }
0x11c1   :  { %v1293_v15 = vadd.f32 %v2619_v38, %v1288_v47 }
0x11c3   :  { %1824 = vmatmul.msk.f32.vlgmr.msra.gmra.mxu1 %vm59_vm4, %v1293_v15 }
0x11c4   :  { %1566 = vmatpush.msra.mxu1 %v2461_v57  ;;  %v2683_v57 = vld [vmem:[%s2760_s9] ss:$0 sm:$0xff] }
0x11c6   :  { %1567 = vmatpush.msra.mxu1 %v2467_v36 }
0x11c8   :  { %1568 = vmatpush.msra.mxu1 %v2473_v25 }
0x120d   :  { %v1397_v39 = vpop.permute.xlu0 %1396 }
0x120e   :  { %v2672_v40 = vmul.f32 %v1397_v39, %v1380_v12 }
0x1210   :  { %1501 = vrot.lane.b32.xlu0 %v2672_v40, %s2009_s21  ;;  %v1401_v9 = vadd.f32 %v1400_v8, %v2672_v40 }
0x1212   :  { %v1402_v41 = vmul.f32 0.33333334, %v1401_v9 }
0x1214   :  { %1404 = vrot.lane.b32.xlu2 %v1402_v41, %s2009_s21 }
0x1240   :  { %v1314_v10 = vpop.f32.mrf.mxu1 }
0x1241   :  { %v1315_v36 = vadd.f32 %v2683_v57, %v1314_v10 }
0x1243   :  { %v1825_v25 = vmul.f32 -1.442695, %v1315_v36 }
0x1245   :  { %1957 = vpow2.f32 %v1825_v25 }
0x124b   :  { %v1958_v62 = vpop.eup %1957 }
0x124c   :  { %v1320_v60 = vadd.f32 1.0, %v1958_v62 }
0x124e   :  { %1959 = vrcp.f32 %v1320_v60  ;;  %v1332_v11 = vand.u32 2147483648, %v1320_v60  ;;  %v1330_v7 = vand.u32 2147483647, %v1320_v60  ;;  %vm1326_vm2 = vweird.f32 %v1320_v60 }
0x1250   :  { %v1333_v12 = vor.u32 1.1754944e-38, %v1332_v11  ;;  %vm1331_vm10 = vcmp.eq.f32.partialorder %v1330_v7, 8.507059e+37  ;;  %v1611_v7 = vadd.f32 %v2672_v40, %v2588_v42 }
0x1254   :  { %v1960_v24 = vpop.eup %1959 }
0x1255   :  { %v1322_v63 = vmul.f32 %v1960_v24, %v1320_v60  ;;  %vm1327_vm1 = vweird.f32 %v1960_v24 }
0x1256   :  { %vm1328_vm3 = vmor %vm1326_vm2, %vm1327_vm1 }
0x1257   :  { %v1323_v3 = vsub.f32 1.0, %v1322_v63 }
0x1259   :  { %v1324_v6 = vmul.f32 %v1960_v24, %v1323_v3 }
0x125b   :  { %v1325_v4 = vadd.f32 %v1960_v24, %v1324_v6 }
0x125d   :  { %v1329_v19 = vsel %vm1328_vm3, %v1960_v24, %v1325_v4 }
0x125e   :  { %v1334_v35 = vsel %vm1331_vm10, %v1333_v12, %v1329_v19 }
0x125f   :  { %1826 = vst.msk [vmem:[%s2762_s10 + $0x14] sm:$0xf] %vm282_vm9, %v1334_v35 }
0x126e   :  { %v1405_v37 = vpop.permute.xlu2 %1404 }
0x126f   :  { %1830 = vmatmul.msk.f32.vlgmr.msrb.gmra.mxu3 %vm59_vm4, %v1405_v37 }
0x1270   :  { %1842 = vmatpush.msk.msrb.mxu3 %vm159_vm7, %v2605_v29 }
0x1282   :  { %v2698_v1 = vpop.permute.xlu0 %1501 }
0x12f2   :  { %v1425_v43 = vpop.f32.mrf.mxu3 }
0x12f3   :  { %v1426_v21 = vadd.f32 %v2612_v32, %v1425_v43 }
0x12f5   :  { %v1428_v0 = vmax.f32 %v1426_v21, 0.0 }
0x12f7   :  { %1832 = vmatmul.msk.f32.vlgmr.msrb.gmra.mxu1 %vm155_vm8, %v1428_v0 }
0x12f8   :  { %1697 = vmatpush.msrb.mxu1 %v2497_v17 }
0x12fa   :  { %1698 = vmatpush.msrb.mxu1 %v2503_v16  ;;  %v1838_v16 = vld [vmem:[%s2753_s0 + $0x1c] sm:$0xf] }
0x12fc   :  { %1699 = vmatpush.msrb.mxu1 %v2509_v45 }
0x12fe   :  { %1700 = vmatpush.msrb.mxu1 %v2517_v5 }
0x12ff   :  { %1839 = vmatmul.msk.f32.vlgmr.msra.gmra.mxu1 %vm59_vm4, %v2698_v1 }
0x1300   :  { %1701 = vmatpush.msrb.mxu1 %v2525_v18 }
0x1302   :  { %1702 = vmatpush.msrb.mxu1 %v2531_v51 }
0x1304   :  { %1703 = vmatpush.msrb.mxu1 %v2537_v20 }
0x1306   :  { %1704 = vmatpush.msrb.mxu1 %v2543_v22 }
0x1308   :  { %1705 = vmatpush.msrb.mxu1 %v2549_v23 }
0x1374   :  { %v1449_v17 = vpop.f32.mrf.mxu1 }
0x1375   :  { %v1450_v33 = vadd.f32 %v2653_v14, %v1449_v17 }
0x1377   :  { %v1833_v27 = vmul.f32 -1.442695, %v1450_v33 }
0x137c   :  { %v1570_v45 = vpop.f32.mrf.mxu1 }
0x137d   :  { %v1573_v5 = vadd.f32 %v1838_v16, %v1570_v45 }
0x137f   :  { %1961 = vtanh.f32 %v1573_v5  ;;  %v1840_v18 = vmul.f32 -1.442695, %v1573_v5 }
0x1381   :  { %1963 = vpow2.f32 %v1840_v18 }
0x1385   :  { %v1962_v29 = vpop.eup %1961 }
0x1386   :  { %1596 = vrot.lane.b32.xlu1 %v1962_v29, %s2009_s21 }
0x1387   :  { %v1964_v51 = vpop.eup %1963 }
0x1388   :  { %v1577_v20 = vadd.f32 1.0, %v1964_v51 }
0x138a   :  { %1965 = vrcp.f32 %v1577_v20  ;;  %v1589_v49 = vand.u32 2147483648, %v1577_v20  ;;  %vm1583_vm11 = vweird.f32 %v1577_v20  ;;  %v1587_v52 = vand.u32 2147483647, %v1577_v20 }
0x138c   :  { %v1590_v26 = vor.u32 1.1754944e-38, %v1589_v49  ;;  %vm1588_vm13 = vcmp.eq.f32.partialorder %v1587_v52, 8.507059e+37 }
0x138e   :  { %1471 = vrot.lane.b32.xlu1 %v2588_v42, %s2010_s22 }
0x1390   :  { %v1966_v22 = vpop.eup %1965 }
0x1391   :  { %v1579_v23 = vmul.f32 %v1966_v22, %v1577_v20  ;;  %vm1584_vm7 = vweird.f32 %v1966_v22 }
0x1392   :  { %vm1585_vm12 = vmor %vm1583_vm11, %vm1584_vm7 }
0x1393   :  { %v1580_v2 = vsub.f32 1.0, %v1579_v23 }
0x1395   :  { %v1581_v59 = vmul.f32 %v1966_v22, %v1580_v2 }
0x1397   :  { %v1582_v48 = vadd.f32 %v1966_v22, %v1581_v59 }
0x1399   :  { %v1586_v13 = vsel %vm1585_vm12, %v1966_v22, %v1582_v48 }
0x139a   :  { %v1591_v55 = vsel %vm1588_vm13, %v1590_v26, %v1586_v13 }
0x139b   :  { %v1594_v61 = vmul.f32 %v1591_v55, %v2657_v50 }
0x13f8   :  { %v1597_v54 = vpop.permute.xlu1 %1596 }
0x13f9   :  { %v1599_v56 = vmul.f32 %v1597_v54, %v1591_v55 }
0x13fb   :  { %1601 = vrot.lane.b32.xlu2 %v1599_v56, %s2010_s22 }
0x1400   :  { %v1472_v58 = vpop.permute.xlu1 %1471 }
0x1401   :  { %v1474_v44 = vsel %vm59_vm4, %v2512_v46, %v1472_v58 }
0x1402   :  { %v1475_v30 = vsel %vm202_vm5, %v1474_v44, %v2672_v40 }
0x1403   :  { %1834 = vmatmul.msk.f32.vlgmr.msrb.gmra.mxu2 %vm207_vm6, %v1475_v30 }
0x1455   :  { %v1602_v53 = vpop.permute.xlu2 %1601 }
0x1456   :  { %v1604_v31 = vadd.f32 %v1602_v53, %v1594_v61 }
0x1458   :  { %1967 = vtanh.f32 %v1604_v31 }
0x1459   :  { %1969 = vpow2.f32 %v1833_v27 }
0x145e   :  { %v1968_v28 = vpop.eup %1967 }
0x145f   :  { %1607 = vrot.lane.b32.xlu0 %v1968_v28, %s2011_s23  ;;  %v1970_v47 = vpop.eup %1969 }
0x1460   :  { %v1455_v46 = vadd.f32 1.0, %v1970_v47 }
0x1462   :  { %1971 = vrcp.f32 %v1455_v46  ;;  %v1467_v41 = vand.u32 2147483648, %v1455_v46  ;;  %vm1461_vm15 = vweird.f32 %v1455_v46  ;;  %v1465_v10 = vand.u32 2147483647, %v1455_v46 }
0x1464   :  { %v1468_v25 = vor.u32 1.1754944e-38, %v1467_v41  ;;  %vm1466_vm1 = vcmp.eq.f32.partialorder %v1465_v10, 8.507059e+37 }
0x1467   :  { %1682 = vrot.lane.b32.xlu0 %v2672_v40, %s2010_s22 }
0x1468   :  { %v1972_v15 = vpop.eup %1971 }
0x1469   :  { %v1457_v39 = vmul.f32 %v1972_v15, %v1455_v46  ;;  %vm1462_vm14 = vweird.f32 %v1972_v15 }
0x146a   :  { %vm1463_vm0 = vmor %vm1461_vm15, %vm1462_vm14 }
0x146b   :  { %v1458_v8 = vsub.f32 1.0, %v1457_v39 }
0x146d   :  { %v1459_v50 = vmul.f32 %v1972_v15, %v1458_v8 }
0x146f   :  { %v1460_v9 = vadd.f32 %v1972_v15, %v1459_v50 }
0x1471   :  { %v1464_v36 = vsel %vm1463_vm0, %v1972_v15, %v1460_v9 }
0x1472   :  { %v1469_v24 = vsel %vm1466_vm1, %v1468_v25, %v1464_v36 }
0x1486   :  { %v1496_v62 = vpop.f32.mrf.mxu2 }
0x1487   :  { %v1497_v60 = vadd.f32 %v2664_v34, %v1496_v62 }
0x1489   :  { %v1499_v63 = vmul.f32 %v1497_v60, %v1469_v24 }
0x148b   :  { %v1504_v3 = vadd.f32 %v2698_v1, %v1499_v63 }
0x148d   :  { %1835 = vmatmul.msk.f32.vlgmr.msra.gmra.mxu3 %vm59_vm4, %v1504_v3 }
0x14d1   :  { %v1608_v11 = vpop.permute.xlu0 %1607 }
0x14d2   :  { %v1610_v6 = vmul.f32 %v1608_v11, %v1591_v55 }
0x14d4   :  { %1712 = vrot.lane.b32.xlu1 %v1610_v6, %s2009_s21  ;;  %v1612_v4 = vadd.f32 %v1611_v7, %v1610_v6 }
0x14d6   :  { %v1613_v12 = vmul.f32 0.33333334, %v1612_v4 }
0x14d8   :  { %1615 = vrot.lane.b32.xlu2 %v1613_v12, %s2009_s21 }
0x14d9   :  { %v1683_v19 = vpop.permute.xlu0 %1682 }
0x14da   :  { %v1685_v35 = vsel %vm59_vm4, %v2619_v38, %v1683_v19 }
0x14db   :  { %v1686_v37 = vsel %vm202_vm5, %v1685_v35, %v1610_v6 }
0x14dc   :  { %1845 = vmatmul.msk.f32.vlgmr.msrb.gmra.mxu1 %vm207_vm6, %v1686_v37 }
0x1510   :  { %v1525_v43 = vpop.f32.mrf.mxu3 }
0x1511   :  { %v1526_v21 = vadd.f32 %v2683_v57, %v1525_v43 }
0x1513   :  { %v1836_v0 = vmul.f32 -1.442695, %v1526_v21 }
0x1515   :  { %1973 = vpow2.f32 %v1836_v0 }
0x151b   :  { %v1974_v42 = vpop.eup %1973 }
0x151c   :  { %v1531_v40 = vadd.f32 1.0, %v1974_v42 }
0x151e   :  { %1975 = vrcp.f32 %v1531_v40  ;;  %v1543_v45 = vand.u32 2147483648, %v1531_v40  ;;  %v1541_v29 = vand.u32 2147483647, %v1531_v40  ;;  %vm1537_vm3 = vweird.f32 %v1531_v40 }
0x1520   :  { %v1544_v18 = vor.u32 1.1754944e-38, %v1543_v45  ;;  %vm1542_vm6 = vcmp.eq.f32.partialorder %v1541_v29, 8.507059e+37 }
0x1524   :  { %v1976_v1 = vpop.eup %1975 }
0x1525   :  { %v1533_v17 = vmul.f32 %v1976_v1, %v1531_v40  ;;  %vm1538_vm2 = vweird.f32 %v1976_v1 }
0x1526   :  { %vm1539_vm5 = vmor %vm1537_vm3, %vm1538_vm2 }
0x1527   :  { %v1534_v16 = vsub.f32 1.0, %v1533_v17 }
0x1529   :  { %v1535_v5 = vmul.f32 %v1976_v1, %v1534_v16 }
0x152b   :  { %v1536_v38 = vadd.f32 %v1976_v1, %v1535_v5 }
0x152d   :  { %v1540_v51 = vsel %vm1539_vm5, %v1976_v1, %v1536_v38 }
0x152e   :  { %v1545_v20 = vsel %vm1542_vm6, %v1544_v18, %v1540_v51 }
0x152f   :  { %1837 = vst.msk [vmem:[%s2762_s10 + $0x18] sm:$0xf] %vm282_vm9, %v1545_v20 }
0x1532   :  { %v1616_v22 = vpop.permute.xlu2 %1615 }
0x1533   :  { %1841 = vmatmul.msk.f32.vlgmr.msra.gmra.mxu0 %vm59_vm4, %v1616_v22 }
0x1546   :  { %v1713_v28 = vpop.permute.xlu1 %1712 }
0x1559   :  { %v1707_v61 = vpop.f32.mrf.mxu1 }
0x155a   :  { %v1708_v31 = vadd.f32 %v2664_v34, %v1707_v61 }
0x15b0   :  { %v1636_v23 = vpop.f32.mrf.mxu0 }
0x15b1   :  { %v1637_v2 = vadd.f32 %v2612_v32, %v1636_v23 }
0x15b3   :  { %v1639_v59 = vmax.f32 %v1637_v2, 0.0 }
0x15b5   :  { %1843 = vmatmul.msk.f32.vlgmr.msrb.gmra.mxu3 %vm155_vm8, %v1639_v59 }
0x1638   :  { %v1660_v48 = vpop.f32.mrf.mxu3 }
0x1639   :  { %v1661_v49 = vadd.f32 %v2653_v14, %v1660_v48 }
0x163b   :  { %v1844_v52 = vmul.f32 -1.442695, %v1661_v49 }
0x163d   :  { %1977 = vpow2.f32 %v1844_v52 }
0x1643   :  { %v1978_v13 = vpop.eup %1977 }
0x1644   :  { %v1666_v26 = vadd.f32 1.0, %v1978_v13 }
0x1646   :  { %1979 = vrcp.f32 %v1666_v26  ;;  %v1678_v58 = vand.u32 2147483648, %v1666_v26  ;;  %v1676_v30 = vand.u32 2147483647, %v1666_v26  ;;  %vm1672_vm7 = vweird.f32 %v1666_v26 }
0x1648   :  { %v1679_v53 = vor.u32 1.1754944e-38, %v1678_v58  ;;  %vm1677_vm8 = vcmp.eq.f32.partialorder %v1676_v30, 8.507059e+37 }
0x164c   :  { %v1980_v54 = vpop.eup %1979 }
0x164d   :  { %v1668_v55 = vmul.f32 %v1980_v54, %v1666_v26  ;;  %vm1673_vm10 = vweird.f32 %v1980_v54 }
0x164e   :  { %vm1674_vm11 = vmor %vm1672_vm7, %vm1673_vm10 }
0x164f   :  { %v1669_v56 = vsub.f32 1.0, %v1668_v55 }
0x1651   :  { %v1670_v44 = vmul.f32 %v1980_v54, %v1669_v56 }
0x1653   :  { %v1671_v32 = vadd.f32 %v1980_v54, %v1670_v44 }
0x1655   :  { %v1675_v14 = vsel %vm1674_vm11, %v1980_v54, %v1671_v32 }
0x1656   :  { %v1680_v33 = vsel %vm1677_vm8, %v1679_v53, %v1675_v14 }
0x1657   :  { %v1710_v27 = vmul.f32 %v1708_v31, %v1680_v33 }
0x1659   :  { %v1715_v47 = vadd.f32 %v1713_v28, %v1710_v27 }
0x165b   :  { %1846 = vmatmul.msk.f32.vlgmr.msrb.gmra.mxu0 %vm59_vm4, %v1715_v47 }
0x16d8   :  { %v1736_v46 = vpop.f32.mrf.mxu0 }
0x16d9   :  { %v1737_v15 = vadd.f32 %v2683_v57, %v1736_v46 }
0x16db   :  { %v1847_v39 = vmul.f32 -1.442695, %v1737_v15 }
0x16dd   :  { %1981 = vpow2.f32 %v1847_v39 }
0x16e3   :  { %v1982_v8 = vpop.eup %1981 }
0x16e4   :  { %v1742_v50 = vadd.f32 1.0, %v1982_v8 }
0x16e6   :  { %1983 = vrcp.f32 %v1742_v50  ;;  %v1754_v34 = vand.u32 2147483648, %v1742_v50  ;;  %v1752_v25 = vand.u32 2147483647, %v1742_v50  ;;  %vm1748_vm13 = vweird.f32 %v1742_v50 }
0x16e8   :  { %v1755_v60 = vor.u32 1.1754944e-38, %v1754_v34  ;;  %vm1753_vm4 = vcmp.eq.f32.partialorder %v1752_v25, 8.507059e+37 }
0x16ec   :  { %v1984_v9 = vpop.eup %1983 }
0x16ed   :  { %v1744_v41 = vmul.f32 %v1984_v9, %v1742_v50  ;;  %vm1749_vm12 = vweird.f32 %v1984_v9 }
0x16ee   :  { %vm1750_vm14 = vmor %vm1748_vm13, %vm1749_vm12 }
0x16ef   :  { %v1745_v10 = vsub.f32 1.0, %v1744_v41 }
0x16f1   :  { %v1746_v36 = vmul.f32 %v1984_v9, %v1745_v10 }
0x16f3   :  { %v1747_v62 = vadd.f32 %v1984_v9, %v1746_v36 }
0x16f5   :  { %v1751_v24 = vsel %vm1750_vm14, %v1984_v9, %v1747_v62 }
0x16f6   :  { %v1756_v63 = vsel %vm1753_vm4, %v1755_v60, %v1751_v24 }
0x16f7   :  { %1848 = vst.msk [vmem:[%s2762_s10 + $0x1c] sm:$0xf] %vm282_vm9, %v1756_v63 }

</bundles_post_ra>
